<compile_context>
chip_gen: v7x
topology: tpu7x:2x2x1
jax: 0.10.0
libtpu: 0.0.40
codegen_flags: <defaults>
</compile_context>

<pallas_src>
from functools import partial

import numpy as np
import jax
import jax.numpy as jnp
from jax import lax
from jax.experimental import pallas as pl
from jax.experimental.pallas import tpu as pltpu


def _round_up(x, m):
    return ((x + m - 1) // m) * m


# ----------------------------------------------------------------------------
# Pallas kernel: grouped (per-class) Gram matrices over label-sorted rows
# ----------------------------------------------------------------------------
def _grouped_gram_kernel(blk_ref, cls_ref, first_ref, lo_ref, hi_ref, z_ref, g_ref):
    """One schedule step: accumulate rows [lo, hi) of the current (tn, d) tile into the
    current class's (d, d) Gram, which lives in the (revisited) output block."""
    t = pl.program_id(1)
    lo = lo_ref[t]
    hi = hi_ref[t]

    @pl.when(first_ref[t] == 1)
    def _init():
        # First step of this class's run: the output block is fresh -> zero it.
        g_ref[...] = jnp.zeros_like(g_ref)

    @pl.when(hi > lo)
    def _accumulate():
        z = z_ref[...]                                            # (tn, d) f32
        rows = lax.broadcasted_iota(jnp.int32, z.shape, 0)
        zm = jnp.where(jnp.logical_and(rows >= lo, rows < hi), z, 0.0)
        # bf16 hi/lo split == lax.Precision.HIGH (3 MXU passes) with f32 accumulation;
        # ~2x cheaper than the previous f32 HIGHEST matmul, accuracy ~1e-6 relative.
        zm_hi = zm.astype(jnp.bfloat16)
        zm_lo = (zm - zm_hi.astype(jnp.float32)).astype(jnp.bfloat16)
        z_hi = z.astype(jnp.bfloat16)
        z_lo = (z - z_hi.astype(jnp.float32)).astype(jnp.bfloat16)
        dims = (((0,), (0,)), ((), ()))                           # zm.T @ z -> (d, d)
        acc = lax.dot_general(zm_hi, z_hi, dims, preferred_element_type=jnp.float32)
        acc = acc + lax.dot_general(zm_hi, z_lo, dims, preferred_element_type=jnp.float32)
        acc = acc + lax.dot_general(zm_lo, z_hi, dims, preferred_element_type=jnp.float32)
        g_ref[...] += acc


def _pick_row_tile(n, d):
    # Big tiles amortize per-step overhead (review: 1024-2048 on v6e, 512-1024 on v5e).
    # Cap so double-buffered f32 input + in-kernel bf16 temporaries stay < ~12 MiB,
    # keeping the whole kernel comfortably inside v7x's 64 MiB VMEM.
    tn = 1024
    while tn > 128 and (2 * tn * d * 4 + 3 * tn * d * 2) > 12 * 1024 * 1024:
        tn //= 2
    return min(tn, _round_up(n, 8))


def _build_group_metadata(labels, num_classes, tn, nb):
    """Per-step schedule for the grouped Gram kernel.

    Rows are sorted by class; class j occupies rows [starts[j], ends[j]).  Each step
    handles the intersection of one class with one row block.  Every class (incl. empty
    ones) gets >= 1 step so its output block is zero-initialized.  Total real steps
    R <= nb + K - 1; arrays are padded to the static length T = nb + K with no-op steps
    that keep the last class/block selected (no extra DMA, no compute)."""
    counts = jnp.bincount(labels, length=num_classes).astype(jnp.int32)
    starts = jnp.concatenate(
        [jnp.zeros((1,), jnp.int32), jnp.cumsum(counts)[:-1].astype(jnp.int32)])
    ends = starts + counts

    first_blk = starts // tn
    last_blk = jnp.where(counts > 0, jnp.maximum(ends - 1, 0) // tn, first_blk)
    nblk = jnp.where(counts > 0, last_blk - first_blk + 1, 1).astype(jnp.int32)
    offs = jnp.concatenate(
        [jnp.zeros((1,), jnp.int32), jnp.cumsum(nblk).astype(jnp.int32)])     # (K+1,)
    num_steps = offs[-1]

    T = nb + num_classes                                   # static upper bound on steps
    t = jnp.arange(T, dtype=jnp.int32)
    cls = jnp.clip(jnp.searchsorted(offs, t, side="right").astype(jnp.int32) - 1,
                   0, num_classes - 1)
    k_raw = t - offs[cls]
    k = jnp.minimum(k_raw, nblk[cls] - 1)
    blk = jnp.minimum(first_blk[cls] + k, nb - 1)
    valid = t < num_steps

    first = jnp.logical_and(valid, k_raw == 0).astype(jnp.int32)
    lo = jnp.clip(starts[cls] - blk * tn, 0, tn)
    hi = jnp.maximum(jnp.clip(ends[cls] - blk * tn, 0, tn), lo)
    lo = jnp.where(valid, lo, 0).astype(jnp.int32)
    hi = jnp.where(valid, hi, 0).astype(jnp.int32)
    return blk.astype(jnp.int32), cls.astype(jnp.int32), first, lo, hi


def per_class_grams(zs, labels, num_classes, *, row_tile=None):
    """zs: (S, n, d) float, labels: (n,) int in [0, num_classes)  (as torch.F.one_hot
    requires).  Returns (S, K, d, d) float32: out[s, j] = Z_s[labels==j].T @ Z_s[labels==j]."""
    S, n, d = zs.shape
    zs = zs.astype(jnp.float32)
    labels = labels.astype(jnp.int32)

    # Small-problem fallback: Pallas dispatch + per-step overhead dominates tiny shapes;
    # XLA fusion is faster there (review item 11).
    if row_tile is None and n * d <= 32 * 1024 and num_classes <= 64:
        onehot = jax.nn.one_hot(labels, num_classes, dtype=jnp.float32)
        return jnp.einsum("nk,snd,sne->skde", onehot, zs, zs,
                          precision=lax.Precision.HIGHEST)

    tn = _pick_row_tile(n, d) if row_tile is None else min(
        _round_up(row_tile, 8), _round_up(n, 8))
    n_pad = _round_up(n, tn)
    nb = n_pad // tn

    # Group rows by class so each row is DMA'd / multiplied once.
    order = jnp.argsort(labels)
    zs_sorted = jnp.take(zs, order, axis=1)
    if n_pad != n:
        zs_sorted = jnp.pad(zs_sorted, ((0, 0), (0, n_pad - n), (0, 0)))

    blk, cls, first, lo, hi = _build_group_metadata(labels, num_classes, tn, nb)
    T = int(blk.shape[0])

    flops = 3 * 2.0 * S * n_pad * d * d                    # 3 bf16 passes, each row once
    bytes_accessed = 4.0 * (S * n_pad * d + S * num_classes * d * d + 5 * T)

    grid_spec = pltpu.PrefetchScalarGridSpec(
        num_scalar_prefetch=5,
        grid=(S, T),
        in_specs=[
            pl.BlockSpec((None, tn, d),
                         lambda s, t, b_r, c_r, f_r, l_r, h_r: (s, b_r[t], 0)),
        ],
        out_specs=pl.BlockSpec(
            (None, None, d, d),
            lambda s, t, b_r, c_r, f_r, l_r, h_r: (s, c_r[t], 0, 0)),
    )

    return pl.pallas_call(
        _grouped_gram_kernel,
        out_shape=jax.ShapeDtypeStruct((S, num_classes, d, d), jnp.float32),
        grid_spec=grid_spec,
        compiler_params=pltpu.CompilerParams(
            # S axis parallel -> shards across v7x's 2 TensorCores; schedule axis is the
            # (sequential) reduction/revisit axis.
            dimension_semantics=("parallel", "arbitrary"),
            # Above the 32 MiB default, below v7x's 64 MiB physical VMEM.
            vmem_limit_bytes=48 * 1024 * 1024,
        ),
        cost_estimate=pl.CostEstimate(flops=int(flops), transcendentals=0,
                                      bytes_accessed=int(bytes_accessed)),
    )(blk, cls, first, lo, hi, zs_sorted)


# ----------------------------------------------------------------------------
# Loss terms from the Gram matrices (plain JAX; log-det has no Pallas equivalent)
# ----------------------------------------------------------------------------
def _class_counts(labels, num_classes):
    return jnp.bincount(labels.astype(jnp.int32), length=num_classes).astype(jnp.float32)


def _delta_r_from_grams(grams, counts, n, d, eps):
    """Matches MCRGANloss.deltaR (fast_version): returns (total, discrimn,
    compress_term, compress_losses, scalars)."""
    eye = jnp.eye(d, dtype=jnp.float32)
    disc_mat = eye + (d / (n * eps)) * jnp.sum(grams, axis=0)
    tr_pi = counts + 1e-8
    comp_scale = d / (tr_pi * eps)
    comp_mats = eye[None, :, :] + comp_scale[:, None, None] * grams
    mats = jnp.concatenate([disc_mat[None], comp_mats], axis=0)
    logdets = jnp.linalg.slogdet(mats)[1]          # batched log-det (LU on TPU)
    discrimn = 0.5 * logdets[0]
    comp_losses = jnp.where(counts > 0.5, logdets[1:], jnp.float32(1.0))
    scalars = tr_pi / (2.0 * n)
    compress_term = jnp.sum(scalars * comp_losses)
    total = -(discrimn - compress_term)
    return total, discrimn, compress_term, comp_losses, scalars


def _cross_discrimn_sum(gz, gzbar, counts, d, eps):
    """sum_j R(cat(Z_j, Zbar_j)) = sum_j 0.5*logdet(I + d/(2 n_j eps) (Gz_j+Gzbar_j))."""
    eye = jnp.eye(d, dtype=jnp.float32)
    scale = d / (2.0 * jnp.maximum(counts, 1.0) * eps)     # guard empty classes
    mats = eye[None, :, :] + scale[:, None, None] * (gz + gzbar)
    lds = 0.5 * jnp.linalg.slogdet(mats)[1]
    return jnp.sum(jnp.where(counts > 0.5, lds, 0.0))


@partial(jax.jit, static_argnames=("num_classes", "eps", "gam1", "gam2", "gam3"))
def _mode1_loss(Z, Z_bar, labels, *, num_classes, eps, gam1, gam2, gam3):
    # NOTE: labels are assumed to lie in [0, num_classes), exactly as torch.F.one_hot
    # requires in the reference implementation.
    n, d = Z.shape
    grams = per_class_grams(jnp.stack([Z, Z_bar], axis=0), labels, num_classes)
    counts = _class_counts(labels, num_classes)
    z_total, z_disc, z_comp, z_losses, _ = _delta_r_from_grams(grams[0], counts, n, d, eps)
    zb_total, zb_disc, zb_comp, zb_losses, _ = _delta_r_from_grams(grams[1], counts, n, d, eps)
    item_r = _cross_discrimn_sum(grams[0], grams[1], counts, d, eps)
    err_d_ = (gam1 * (z_disc - z_comp)
              + gam2 * (zb_disc - zb_comp)
              + gam3 * (item_r - 0.25 * jnp.sum(z_losses) - 0.25 * jnp.sum(zb_losses)))
    err_d = -err_d_
    term3 = -item_r + 0.25 * jnp.sum(z_losses) + 0.25 * jnp.sum(zb_losses)
    return err_d, (z_total, zb_total, term3)


@partial(jax.jit, static_argnames=("num_classes", "eps"))
def _delta_r(Z, labels, *, num_classes, eps):
    n, d = Z.shape
    grams = per_class_grams(Z[None], labels, num_classes)[0]
    counts = _class_counts(labels, num_classes)
    return _delta_r_from_grams(grams, counts, n, d, eps)


# ----------------------------------------------------------------------------
# Module mirror
# ----------------------------------------------------------------------------
class MCRGANloss:
    def __init__(self, gam1=1.0, gam2=1.0, gam3=1.0, eps=0.5,
                 numclasses=1000, mode=1, rho=None):
        self.num_class = numclasses
        self.train_mode = mode
        self.gam1 = gam1
        self.gam2 = gam2
        self.gam3 = gam3
        self.eps = eps

    def __call__(self, Z, Z_bar, real_label, ith_inner_loop, num_inner_loop):
        return self.forward(Z, Z_bar, real_label, ith_inner_loop, num_inner_loop)

    def forward(self, Z, Z_bar, real_label, ith_inner_loop, num_inner_loop):
        if self.train_mode == 1:
            return _mode1_loss(Z, Z_bar, real_label,
                               num_classes=self.num_class, eps=self.eps,
                               gam1=self.gam1, gam2=self.gam2, gam3=self.gam3)
        elif self.train_mode == 2:
            assert num_inner_loop >= 2
            if (ith_inner_loop + 1) % num_inner_loop != 0:
                z_total = _delta_r(Z, real_label,
                                   num_classes=self.num_class, eps=self.eps)[0]
                return z_total, None
            return _mode1_loss(Z, Z_bar, real_label,
                               num_classes=self.num_class, eps=self.eps,
                               gam1=self.gam1, gam2=self.gam2, gam3=self.gam3)
        elif self.train_mode == 0:
            new_z = jnp.concatenate([Z, Z_bar], axis=0)
            new_label = jnp.concatenate(
                [jnp.zeros_like(real_label), jnp.ones_like(real_label)])
            total, disc, comp, _, _ = _delta_r(new_z, new_label,
                                               num_classes=2, eps=self.eps)
            return total, (disc, comp)
        else:
            # TODO(synk): train_mode == 10 (double_loop) is referenced but not defined
            # in the reference source; not implemented.
            raise ValueError(f"unsupported train_mode={self.train_mode}")


# ----------------------------------------------------------------------------
# float64 numpy references
# ----------------------------------------------------------------------------
def _reference_grams(zs, labels, num_classes):
    zs = np.asarray(zs, dtype=np.float64)
    labels = np.asarray(labels)
    S, n, d = zs.shape
    out = np.zeros((S, num_classes, d, d), dtype=np.float64)
    for s in range(S):
        for j in range(num_classes):
            zj = zs[s][labels == j]
            if zj.shape[0]:
                out[s, j] = zj.T @ zj
    return out


def _reference_mode1(Z, Z_bar, labels, num_classes, eps, gam1, gam2, gam3):
    Z = np.asarray(Z, dtype=np.float64)
    Z_bar = np.asarray(Z_bar, dtype=np.float64)
    labels = np.asarray(labels)

    def logdet(m):
        return np.linalg.slogdet(m)[1]

    def discrimn(zt):                       # zt: (d, n)
        d, n = zt.shape
        return logdet(np.eye(d) + (d / (n * eps)) * zt @ zt.T) / 2.0

    def compress(zt, pi):
        d, n = zt.shape
        losses, scalars = [], []
        for j in range(pi.shape[1]):
            z_ = zt[:, pi[:, j] == 1]
            tr = pi[:, j].sum() + 1e-8
            ld = 1.0 if pi[:, j].sum() == 0 else logdet(
                np.eye(d) + (d / (tr * eps)) * z_ @ z_.T)
            losses.append(ld)
            scalars.append(tr / (2 * n))
        return losses, scalars

    def delta_r(zm, y, k):
        pi = np.eye(k)[y]
        disc = discrimn(zm.T)
        losses, scalars = compress(zm.T, pi)
        comp = sum(s * l for s, l in zip(scalars, losses))
        return -(disc - comp), disc, comp, losses

    z_total, z_disc, z_comp, z_losses = delta_r(Z, labels, num_classes)
    zb_total, zb_disc, zb_comp, zb_losses = delta_r(Z_bar, labels, num_classes)
    item_r = 0.0
    for j in range(num_classes):
        new_z = np.concatenate([Z[labels == j], Z_bar[labels == j]], axis=0)
        item_r += discrimn(new_z.T)
    err_d_ = (gam1 * (z_disc - z_comp) + gam2 * (zb_disc - zb_comp)
              + gam3 * (item_r - 0.25 * sum(z_losses) - 0.25 * sum(zb_losses)))
    err_d = -err_d_
    term3 = -item_r + 0.25 * sum(z_losses) + 0.25 * sum(zb_losses)
    return err_d, (z_total, zb_total, term3)


if __name__ == "__main__":
    key = jax.random.PRNGKey(0)
    k_z, k_zb, k_perm, k_z2, k_zb2 = jax.random.split(key, 5)

    # ---------- Case 1: Pallas grouped-Gram kernel (uneven classes, block crossings) --
    n, d, K = 1024, 64, 8
    class_counts = [200, 56, 300, 8, 160, 120, 100, 80]     # sums to 1024, uneven
    labels_np = np.repeat(np.arange(K, dtype=np.int32), class_counts)
    perm = jax.random.permutation(k_perm, n)
    labels = jnp.asarray(labels_np)[perm]

    Z = jax.random.normal(k_z, (n, d), dtype=jnp.float32)
    Z_bar = jax.random.normal(k_zb, (n, d), dtype=jnp.float32)

    # 1a. direct check of the Pallas per-class Grams: small row tile forces classes that
    #     span multiple row blocks; num_classes=10 adds two empty classes.
    gram_fn = jax.jit(lambda z, l: per_class_grams(z, l, 10, row_tile=256))
    grams = jax.block_until_ready(gram_fn(jnp.stack([Z, Z_bar]), labels))
    ref_g = _reference_grams(np.stack([np.asarray(Z), np.asarray(Z_bar)]),
                             np.asarray(labels), 10)
    np.testing.assert_allclose(np.asarray(grams), ref_g, rtol=1e-3, atol=1e-2)

    # 1b. end-to-end loss through the Pallas path, vs the float64 numpy reference.
    loss_fn = MCRGANloss(gam1=1.0, gam2=1.0, gam3=1.0, eps=0.5, numclasses=K, mode=1)
    err_d, empi = loss_fn(Z, Z_bar, labels, 0, 2)
    err_d = jax.block_until_ready(err_d)
    empi = jax.block_until_ready(empi)
    ref_err, ref_empi = _reference_mode1(Z, Z_bar, labels, K,
                                         eps=0.5, gam1=1.0, gam2=1.0, gam3=1.0)
    np.testing.assert_allclose(float(err_d), ref_err, rtol=3e-3, atol=3e-2)
    for got, want in zip(empi, ref_empi):
        np.testing.assert_allclose(float(got), want, rtol=3e-3, atol=3e-2)

    # ---------- Case 2: tiny problem -> XLA-fusion fallback path ----------------------
    n2, d2, K2 = 64, 32, 4
    Z2 = jax.random.normal(k_z2, (n2, d2), dtype=jnp.float32)
    Z2_bar = jax.random.normal(k_zb2, (n2, d2), dtype=jnp.float32)
    labels2 = jnp.arange(n2, dtype=jnp.int32) % K2
    loss_fn2 = MCRGANloss(gam1=1.0, gam2=1.0, gam3=1.0, eps=0.5, numclasses=K2, mode=1)
    err_d2, empi2 = loss_fn2(Z2, Z2_bar, labels2, 0, 2)
    err_d2 = jax.block_until_ready(err_d2)
    ref_err2, ref_empi2 = _reference_mode1(Z2, Z2_bar, labels2, K2,
                                           eps=0.5, gam1=1.0, gam2=1.0, gam3=1.0)
    np.testing.assert_allclose(float(err_d2), ref_err2, rtol=2e-3, atol=2e-2)
    for got, want in zip(empi2, ref_empi2):
        np.testing.assert_allclose(float(got), want, rtol=2e-3, atol=2e-2)

    print("KERNEL_OK")
</pallas_src>

<mosaic_0001>
module attributes {stable_mosaic.version = 11 : i64} {
  func.func private @main(%arg0: i32) attributes {dimension_semantics = [#tpu.dimension_semantics<core_parallel>], iteration_bounds = array<i64: 2>, tpu.core_type = #tpu.core_type<sc_scalar_subcore>, window_params = []} {
    return
  }
}

module attributes {stable_mosaic.version = 11 : i64} {
  func.func private @main(%arg0: i32) attributes {dimension_semantics = [#tpu.dimension_semantics<core_parallel>], iteration_bounds = array<i64: 2>, tpu.core_type = #tpu.core_type<sc_scalar_subcore>, window_params = []} {
    return
  }
}

module attributes {stable_mosaic.version = 11 : i64} {
  func.func @_grouped_gram_kernel(%arg0: i32, %arg1: i32, %arg2: memref<14xi32, #tpu.memory_space<smem>>, %arg3: memref<14xi32, #tpu.memory_space<smem>>, %arg4: memref<14xi32, #tpu.memory_space<smem>>, %arg5: memref<14xi32, #tpu.memory_space<smem>>, %arg6: memref<14xi32, #tpu.memory_space<smem>>, %arg7: memref<1x256x64xf32, #tpu.memory_space<vmem>>, %arg8: memref<1x1x64x64xf32, #tpu.memory_space<vmem>>) attributes {dimension_semantics = [#tpu.dimension_semantics<parallel>, #tpu.dimension_semantics<arbitrary>], iteration_bounds = array<i64: 2, 14>, scalar_prefetch = 5 : i64, scratch_operands = 0 : i64, tpu.core_type = #tpu.core_type<tc>, window_params = [{transform_indices = @transform_0, window_bounds = array<i64: 1, 256, 64>}, {transform_indices = @transform_1, window_bounds = array<i64: 1, 1, 64, 64>}]} {
    %0 = arith.index_cast %arg1 : i32 to index
    %1 = memref.load %arg5[%0] : memref<14xi32, #tpu.memory_space<smem>>
    %2 = arith.index_cast %arg1 : i32 to index
    %3 = memref.load %arg6[%2] : memref<14xi32, #tpu.memory_space<smem>>
    %4 = arith.index_cast %arg1 : i32 to index
    %5 = memref.load %arg4[%4] : memref<14xi32, #tpu.memory_space<smem>>
    %c1_i32 = arith.constant 1 : i32
    %6 = arith.cmpi eq, %5, %c1_i32 : i32
    %7 = arith.extui %6 : i1 to i32
    %c0_i32 = arith.constant 0 : i32
    %8 = arith.cmpi ne, %7, %c0_i32 : i32
    scf.if %8 {
      %cst = arith.constant 0.000000e+00 : f32
      %12 = vector.broadcast %cst : f32 to vector<64x64xf32>
      %c0 = arith.constant 0 : index
      %c0_1 = arith.constant 0 : index
      %c0_2 = arith.constant 0 : index
      %c0_3 = arith.constant 0 : index
      %13 = vector.load %arg8[%c0, %c0_1, %c0_2, %c0_3] : memref<1x1x64x64xf32, #tpu.memory_space<vmem>>, vector<1x1x64x64xf32>
      %14 = vector.shape_cast %13 : vector<1x1x64x64xf32> to vector<64x64xf32>
      %15 = vector.shape_cast %12 : vector<64x64xf32> to vector<1x1x64x64xf32>
      tpu.vector_store %arg8[%c0, %c0_1, %c0_2, %c0_3], %15 {strides = array<i32>} : memref<1x1x64x64xf32, #tpu.memory_space<vmem>>, vector<1x1x64x64xf32>,
    } else {
    }
    %9 = arith.cmpi sgt, %3, %1 : i32
    %10 = arith.extui %9 : i1 to i32
    %c0_i32_0 = arith.constant 0 : i32
    %11 = arith.cmpi ne, %10, %c0_i32_0 : i32
    scf.if %11 {
      %c0 = arith.constant 0 : index
      %c0_1 = arith.constant 0 : index
      %c0_2 = arith.constant 0 : index
      %12 = vector.load %arg7[%c0, %c0_1, %c0_2] : memref<1x256x64xf32, #tpu.memory_space<vmem>>, vector<1x256x64xf32>
      %13 = vector.shape_cast %12 : vector<1x256x64xf32> to vector<256x64xf32>
      %14 = tpu.iota {dimensions = array<i32: 0>} : vector<256x64xi32>
      %15 = vector.broadcast %1 : i32 to vector<256x64xi32>
      %16 = arith.cmpi sge, %14, %15 : vector<256x64xi32>
      %17 = vector.broadcast %3 : i32 to vector<256x64xi32>
      %18 = arith.cmpi slt, %14, %17 : vector<256x64xi32>
      %19 = arith.andi %16, %18 : vector<256x64xi1>
      %cst = arith.constant 0.000000e+00 : f32
      %20 = vector.broadcast %cst : f32 to vector<256x64xf32>
      %21 = arith.select %19, %13, %20 : vector<256x64xi1>, vector<256x64xf32>
      %22 = arith.truncf %21 : vector<256x64xf32> to vector<256x64xbf16>
      %23 = arith.extf %22 : vector<256x64xbf16> to vector<256x64xf32>
      %24 = arith.subf %21, %23 : vector<256x64xf32>
      %25 = arith.truncf %24 : vector<256x64xf32> to vector<256x64xbf16>
      %26 = arith.truncf %13 : vector<256x64xf32> to vector<256x64xbf16>
      %27 = arith.extf %26 : vector<256x64xbf16> to vector<256x64xf32>
      %28 = arith.subf %13, %27 : vector<256x64xf32>
      %29 = arith.truncf %28 : vector<256x64xf32> to vector<256x64xbf16>
      %cst_3 = arith.constant dense<0.000000e+00> : vector<64x64xf32>
      %30 = tpu.matmul %22, %26, %cst_3 {dimension_numbers = #tpu.dot_dimension_numbers<[0], [0], [1], [1], [0, 1, 1, 1], [], []>} : vector<256x64xbf16>, vector<256x64xbf16>, vector<64x64xf32> -> vector<64x64xf32>
      %cst_4 = arith.constant dense<0.000000e+00> : vector<64x64xf32>
      %31 = tpu.matmul %22, %29, %cst_4 {dimension_numbers = #tpu.dot_dimension_numbers<[0], [0], [1], [1], [0, 1, 1, 1], [], []>} : vector<256x64xbf16>, vector<256x64xbf16>, vector<64x64xf32> -> vector<64x64xf32>
      %32 = arith.addf %30, %31 : vector<64x64xf32>
      %cst_5 = arith.constant dense<0.000000e+00> : vector<64x64xf32>
      %33 = tpu.matmul %25, %26, %cst_5 {dimension_numbers = #tpu.dot_dimension_numbers<[0], [0], [1], [1], [0, 1, 1, 1], [], []>} : vector<256x64xbf16>, vector<256x64xbf16>, vector<64x64xf32> -> vector<64x64xf32>
      %34 = arith.addf %32, %33 : vector<64x64xf32>
      %c0_6 = arith.constant 0 : index
      %c0_7 = arith.constant 0 : index
      %c0_8 = arith.constant 0 : index
      %c0_9 = arith.constant 0 : index
      %35 = vector.load %arg8[%c0_6, %c0_7, %c0_8, %c0_9] : memref<1x1x64x64xf32, #tpu.memory_space<vmem>>, vector<1x1x64x64xf32>
      %36 = vector.shape_cast %35 : vector<1x1x64x64xf32> to vector<64x64xf32>
      %37 = arith.addf %36, %34 : vector<64x64xf32>
      %c0_10 = arith.constant 0 : index
      %c0_11 = arith.constant 0 : index
      %c0_12 = arith.constant 0 : index
      %c0_13 = arith.constant 0 : index
      %38 = vector.load %arg8[%c0_10, %c0_11, %c0_12, %c0_13] : memref<1x1x64x64xf32, #tpu.memory_space<vmem>>, vector<1x1x64x64xf32>
      %39 = vector.shape_cast %38 : vector<1x1x64x64xf32> to vector<64x64xf32>
      %40 = vector.shape_cast %37 : vector<64x64xf32> to vector<1x1x64x64xf32>
      tpu.vector_store %arg8[%c0_10, %c0_11, %c0_12, %c0_13], %40 {strides = array<i32>} : memref<1x1x64x64xf32, #tpu.memory_space<vmem>>, vector<1x1x64x64xf32>,
    } else {
    }
    return
  }
  func.func @transform_0(%arg0: i32, %arg1: i32, %arg2: memref<14xi32, #tpu.memory_space<smem>>, %arg3: memref<14xi32, #tpu.memory_space<smem>>, %arg4: memref<14xi32, #tpu.memory_space<smem>>, %arg5: memref<14xi32, #tpu.memory_space<smem>>, %arg6: memref<14xi32, #tpu.memory_space<smem>>) -> (i32, i32, i32) {
    %0 = arith.index_cast %arg1 : i32 to index
    %1 = memref.load %arg2[%0] : memref<14xi32, #tpu.memory_space<smem>>
    %c0_i32 = arith.constant 0 : i32
    %c0_i32_0 = arith.constant 0 : i32
    return %arg0, %1, %c0_i32 : i32, i32, i32
  }
  func.func @transform_1(%arg0: i32, %arg1: i32, %arg2: memref<14xi32, #tpu.memory_space<smem>>, %arg3: memref<14xi32, #tpu.memory_space<smem>>, %arg4: memref<14xi32, #tpu.memory_space<smem>>, %arg5: memref<14xi32, #tpu.memory_space<smem>>, %arg6: memref<14xi32, #tpu.memory_space<smem>>) -> (i32, i32, i32, i32) {
    %0 = arith.index_cast %arg1 : i32 to index
    %1 = memref.load %arg3[%0] : memref<14xi32, #tpu.memory_space<smem>>
    %c0_i32 = arith.constant 0 : i32
    %c0_i32_0 = arith.constant 0 : i32
    %c0_i32_1 = arith.constant 0 : i32
    return %arg0, %1, %c0_i32, %c0_i32_0 : i32, i32, i32, i32
  }
}

</mosaic_0001>

<bundles_post_ra>
// kernel: custom-call.1
= control target key start
LH: loop header
LB: loop body
LE: loop exit
PB: predicated region body
PF: predicated region fallthrough
CT: control target
= control target key end

     0   :  { %s6_s0 = inlined_call_operand.vmem [shape: u32[14], index: 0, kind: output, shape index: {}]  }

// kernel: _lambda_.1
= control target key start
LH: loop header
LB: loop body
LE: loop exit
PB: predicated region body
PF: predicated region fallthrough
CT: control target
= control target key end

     0   :  { %s2276_s0 = inlined_call_operand.vmem [shape: s32[14], index: 0, kind: input, shape index: {}]   ;;  %s2277_s5 = inlined_call_operand.vmem [shape: f32[2,1024,64], index: 5, kind: input, shape index: {}]   ;;  %s2278_s6 = inlined_call_operand.hbm [shape: f32[2,10,64,64], index: 6, kind: output, shape index: {}]   ;;  %s2279_s1 = inlined_call_operand.vmem [shape: s32[14], index: 1, kind: input, shape index: {}]   ;;  %s2280_s2 = inlined_call_operand.vmem [shape: s32[14], index: 2, kind: input, shape index: {}]   ;;  %s2281_s3 = inlined_call_operand.vmem [shape: s32[14], index: 3, kind: input, shape index: {}]   ;;  %s2282_s4 = inlined_call_operand.vmem [shape: s32[14], index: 4, kind: input, shape index: {}]  }
   0x1   :  { %s11_s23 = sshll.u32 %s2276_s0, 4  ;;  %s15_s26 = sshll.u32 %s2279_s1, 4  ;;  %s12_s23 = int_to_ptr.vmem [resolvable:$true] %s11_s23  ;;  %s16_s26 = int_to_ptr.vmem [resolvable:$true] %s15_s26 }
   0x2   :  { %s1215_s27 = scalar_lea.vmem %s12_s23, 16  ;;  %p1220_p1 = scmp.lt.s32.totalorder %s12_s23, %s12_s23 }
   0x3   :  { %p1216_p0 = scmp.ne.s32.totalorder %s12_s23, %s1215_s27  ;;  %p1221_p2 = scmp.lt.s32.totalorder %s1215_s27, %s1215_s27 }
   0x5   :  { %p1222_p3 = por %p1221_p2, %p1220_p1 }
   0x7   :  { %p1223_p4 = pnand %p1222_p3, %p1216_p0 }
   0x9   :  { %1226 = shalt.err (!%p1223_p4)  }
   0xa   :  { %s1373_s28 = smov [#allocation3]   ;;  %s1227_s29 = scalar_lea.vmem %s16_s26, 16 }
   0xb   :  { %14 = dma.vmem_to_smem %s12_s23, 16, %s1373_s28, [#allocation2] }
   0xc   :  { %p1228_p5 = scmp.ne.s32.totalorder %s16_s26, %s1227_s29  ;;  %p1232_p6 = scmp.lt.s32.totalorder %s16_s26, %s16_s26 }
   0xd   :  { %p1233_p7 = scmp.lt.s32.totalorder %s1227_s29, %s1227_s29 }
   0xf   :  { %p1234_p8 = por %p1233_p7, %p1232_p6 }
  0x11   :  { %p1235_p9 = pnand %p1234_p8, %p1228_p5 }
  0x13   :  { %1238 = shalt.err (!%p1235_p9)  }
  0x14   :  { %s1374_s0 = smov [#allocation4]   ;;  %s19_s7 = sshll.u32 %s2280_s2, 4  ;;  %s20_s7 = int_to_ptr.vmem [resolvable:$true] %s19_s7 }
  0x15   :  { %18 = dma.vmem_to_smem %s16_s26, 16, %s1374_s0, [#allocation2] }
  0x16   :  { %s23_s10 = sshll.u32 %s2281_s3, 4  ;;  %s1239_s11 = scalar_lea.vmem %s20_s7, 16  ;;  %s24_s10 = int_to_ptr.vmem [resolvable:$true] %s23_s10 }
  0x17   :  { %p1240_p10 = scmp.ne.s32.totalorder %s20_s7, %s1239_s11  ;;  %p1244_p11 = scmp.lt.s32.totalorder %s20_s7, %s20_s7 }
  0x18   :  { %p1245_p12 = scmp.lt.s32.totalorder %s1239_s11, %s1239_s11 }
  0x1a   :  { %p1246_p13 = por %p1245_p12, %p1244_p11 }
  0x1c   :  { %p1247_p0 = pnand %p1246_p13, %p1240_p10 }
  0x1e   :  { %1250 = shalt.err (!%p1247_p0)  }
  0x1f   :  { %s1375_s12 = smov [#allocation5]   ;;  %s1251_s13 = scalar_lea.vmem %s24_s10, 16 }
  0x20   :  { %22 = dma.vmem_to_smem %s20_s7, 16, %s1375_s12, [#allocation2] }
  0x21   :  { %p1252_p1 = scmp.ne.s32.totalorder %s24_s10, %s1251_s13  ;;  %p1256_p2 = scmp.lt.s32.totalorder %s24_s10, %s24_s10 }
  0x22   :  { %p1257_p3 = scmp.lt.s32.totalorder %s1251_s13, %s1251_s13 }
  0x24   :  { %p1258_p4 = por %p1257_p3, %p1256_p2 }
  0x26   :  { %p1259_p5 = pnand %p1258_p4, %p1252_p1 }
  0x28   :  { %1262 = shalt.err (!%p1259_p5)  }
  0x29   :  { %s1376_s2 = smov [#allocation6]   ;;  %s27_s15 = sshll.u32 %s2282_s4, 4  ;;  %s28_s15 = int_to_ptr.vmem [resolvable:$true] %s27_s15 }
  0x2a   :  { %26 = dma.vmem_to_smem %s24_s10, 16, %s1376_s2, [#allocation2] }
  0x2b   :  { %s1263_s16 = scalar_lea.vmem %s28_s15, 16  ;;  %p1268_p7 = scmp.lt.s32.totalorder %s28_s15, %s28_s15 }
  0x2c   :  { %p1264_p6 = scmp.ne.s32.totalorder %s28_s15, %s1263_s16  ;;  %p1269_p8 = scmp.lt.s32.totalorder %s1263_s16, %s1263_s16 }
  0x2e   :  { %p1270_p9 = por %p1269_p8, %p1268_p7 }
  0x30   :  { %p1271_p10 = pnand %p1270_p9, %p1264_p6 }
  0x32   :  { %1274 = shalt.err (!%p1271_p10)  }
  0x33   :  { %s1377_s17 = smov [#allocation7]  }
  0x34   :  { %30 = dma.vmem_to_smem %s28_s15, 16, %s1377_s17, [#allocation2] }
  0x35   :  { %1335 = dma.done.wait [#allocation2], 80 }
  0x36   :  { %1336 = vsyncadd [#allocation2], 4294967216 }
  0x37   :  { %32 = sfence }
  0x38   :  { %33 = vsyncpa [#allocation9], 0 }
  0x39   :  { %35 = vsyncpa [#allocation9 + $0x1], 0  ;;  %s1432_s18 = smov 0   ;;  %s1434_s19 = smov 0  }
  0x3a   :  { %s1436_s4 = smov 0   ;;  %s1438_s20 = smov 0  }
  0x3b   :  { %s1440_s21 = smov 0   ;;  %s1442_s22 = smov 0  }
  0x3c   :  { %s1444_s23 = smov 0   ;;  %s1446_s24 = smov 0  }
  0x3d LB: > { %s981_s25 = sadd.s32 4294967295, %s1371_s24   ;;  %s982_s26 = sadd.s32 4294967294, %s1371_s24   ;;  %s1371_s24 = sphi %s1446_s24, %s41_s24   ;;  %s1367_s23 = sphi %s1444_s23, %s2432_s23   ;;  %s1363_s22 = sphi %s1442_s22, %s2431_s22   ;;  %s1359_s21 = sphi %s1440_s21, %s2430_s21   ;;  %s1355_s20 = sphi %s1438_s20, %s2429_s20   ;;  %s1351_s4 = sphi %s1436_s4, %s2428_s4   ;;  %s1347_s19 = sphi %s1434_s19, %s2427_s19   ;;  %s1343_s18 = sphi %s1432_s18, %s2426_s18  }
  0x3e   : > { %s50_s27 = sadd.s32 1, %s1363_s22  ;;  %s53_s28 = sadd.s32 1, %s1367_s23 }
  0x3f   : > { %p51_p11 = scmp.ge.s32.totalorder %s50_s27, 14  ;;  %s87_s29 = sld [smem:[#allocation4 + %s1363_s22]] }
  0x40   : > { %p104_p12 = scmp.ne.s32.totalorder %s1351_s4, %s1347_s19  ;;  %p105_p13 = scmp.eq.s32.totalorder %s981_s25, 27 }
  0x41   : > { %s2434_s27 = smov (%p51_p11, %s50_s27), 0  ;;  %s2436_s28 = smov (!%p51_p11, %s53_s28), %s1367_s23 }
  0x42   : > { %s88_s0 = sld [smem:[#allocation4 + %s2434_s27]]  ;;  %p55_p0 = scmp.ge.s32.totalorder %s2436_s28, 2 }
  0x43   : > { %p110_p1 = scmp.ne.s32.totalorder %s1347_s19, %s1343_s18  ;;  %p1485_p2 = por %p105_p13, %p104_p12 }
  0x44   : > { %p111_p3 = scmp.eq.s32.totalorder %s982_s26, 27  ;;  %s2438_s28 = smov (%p55_p0, %s2436_s28), 0 }
  0x45   : > { %p985_p5 = scmp.ge.s32.totalorder %s1371_s24, 1  ;;  %s89_s7 = ssub.s32 %s1367_s23, %s2438_s28 }
  0x46   : > { %p1491_p4 = por %p111_p3, %p110_p1  ;;  %p144_p6 = scmp.lt.s32.totalorder %s1371_s24, 29 }
  0x47   : > { %s94_s9 = sadd.s32 1, %s1351_s4 }
  0x48   : > { %s90_s8 = ssub.s32 %s87_s29, %s88_s0  ;;  %p145_p7 = pnand %p985_p5, %p144_p6 }
  0x49   : > { %s91_s10 = sor.u32 %s90_s8, %s89_s7  ;;  %s166_s12 = sand.u32 (!%p145_p7), 1, %s1347_s19  }
  0x4a   : > { %p92_p8 = scmp.eq.s32.totalorder %s91_s10, 0  ;;  %148 = sbr.rel (%p145_p7) target bundleno = 523 (0x20b), region = 24 }
  0x4b   : > { %s169_s13 = sld [smem:[#allocation3 + %s1355_s20]] (!%p145_p7)  ;;  %s986_s2 = sshll.u32 (!%p145_p7), %s166_s12, 6 }
  0x4c   : > { %s1501_s11 = scalar_select %p92_p8, %s1351_s4, %s94_s9  }
  0x4d   : > { %p171_p9 = scmp.lt.s32.totalorder (!%p145_p7), %s1359_s21, 1  ;;  %s183_s3 = sld [smem:[#allocation6 + %s1355_s20]] (!%p145_p7) }
  0x4e   : > { %s1511_s15 = sld [smem:[#allocation7 + %s1355_s20]] (!%p145_p7)  ;;  %s1519_s9 = scalar_lea.vmem (!%p145_p7), [#allocation8], %s986_s2 }
  0x4f   : > { %s185_s16 = sld [smem:[#allocation5 + %s1355_s20]] (!%p145_p7) }
  0x51   : > { %s172_s14 = scalar_select %p171_p9, %s1359_s21, 1 }
  0x52   : > { %s987_s17 = sshll.u32 %s169_s13, 5 }
  0x53   : > { %p173_p10 = scmp.lt.s32.totalorder %s987_s17, 127  ;;  %s988_s25 = sshll.u32 %s172_s14, 7 }
  0x55   : > { %s2440_s17 = smov (!%p173_p10, %s987_s17), 127  ;;  %p990_p11 = scmp.ne.s32.totalorder %s185_s16, 1 }
  0x56   : > { %s176_s26 = sadd.s32 %s988_s25, %s2440_s17  ;;  %vm190_vm0 = vcmask (!%p990_p11), 523264   ;;  %v1378_v0 = vmov (!%p990_p11), 0.0  }
  0x57   : > { %s989_s29 = sshll.u32 %s176_s26, 3  ;;  %189 = sbr.rel (%p990_p11) target bundleno = 94 (0x5e), region = 28  ;;  %191 = vst.msk [vmem:[%s1519_s9] sm:$0xff] (!%p990_p11), %vm190_vm0, %v1378_v0  ;;  %192 = vst.msk [vmem:[%s1519_s9 + $0x8] sm:$0xff] (!%p990_p11), %vm190_vm0, %v1378_v0 }
  0x58   : > { %s1517_s8 = scalar_lea.vmem %s2277_s5, %s989_s29  ;;  %193 = vst.msk [vmem:[%s1519_s9 + $0x10] sm:$0xff] (!%p990_p11), %vm190_vm0, %v1378_v0  ;;  %194 = vst.msk [vmem:[%s1519_s9 + $0x18] sm:$0xff] (!%p990_p11), %vm190_vm0, %v1378_v0 }
  0x59   : > { %195 = vst.msk [vmem:[%s1519_s9 + $0x20] sm:$0xff] (!%p990_p11), %vm190_vm0, %v1378_v0  ;;  %196 = vst.msk [vmem:[%s1519_s9 + $0x28] sm:$0xff] (!%p990_p11), %vm190_vm0, %v1378_v0 }
  0x5a   : > { %197 = vst.msk [vmem:[%s1519_s9 + $0x30] sm:$0xff] (!%p990_p11), %vm190_vm0, %v1378_v0  ;;  %198 = vst.msk [vmem:[%s1519_s9 + $0x38] sm:$0xff] (!%p990_p11), %vm190_vm0, %v1378_v0 }
  0x5e PF: > { %p991_p12 = scmp.le.s32.totalorder %s1511_s15, %s183_s3 }
  0x60   : > { %202 = sbr.rel (%p991_p12) target bundleno = 496 (0x1f0), region = 32 }
  0x67   : > { %v1531_v1 = vld [vmem:[%s1517_s8 + $0x80] sm:$0xff]  ;;  %v1534_v2 = vld [vmem:[%s1517_s8 + $0x88] sm:$0xff]  ;;  %v235_v3 = vlaneseq  ;;  %v1536_v4 = vstv %s183_s3  ;;  %v1549_v8 = vld [vmem:[%s1517_s8 + $0x90] sm:$0xff] }
  0x68   : > { %v1540_v5 = vpack.c.bf16 %v1534_v2, %v1531_v1  ;;  %v1543_v6 = vld [vmem:[%s1517_s8] sm:$0xff]  ;;  %v1546_v7 = vld [vmem:[%s1517_s8 + $0x8] sm:$0xff]  ;;  %2341 = vst [vmem:[#allocation14_spill] sm:$0xff] %v1549_v8  ;;  %v1554_v10 = vstv %s1511_s15  ;;  %v1561_v12 = vld [vmem:[%s1517_s8 + $0x98] sm:$0xff] }
  0x69   : > { %2340 = vst [vmem:[#allocation13_spill] sm:$0xff] %v1546_v7  ;;  %v1551_v9 = vshrl.u32 %v235_v3, 7  ;;  %v1558_v11 = vpack.c.bf16 %v1546_v7, %v1543_v6  ;;  %2342 = vst [vmem:[#allocation15_spill] sm:$0xff] %v1561_v12  ;;  %v1564_v13 = vld [vmem:[%s1517_s8 + $0x10] sm:$0xff]  ;;  %v1567_v14 = vld [vmem:[%s1517_s8 + $0x18] sm:$0xff]  ;;  %v1571_v15 = vpack.c.bf16 %v1561_v12, %v1549_v8 }
  0x6a   : > { %2343 = vst [vmem:[#allocation16_spill] sm:$0xff] %v1564_v13  ;;  %2344 = vst [vmem:[#allocation17_spill] sm:$0xff] %v1567_v14  ;;  %v1575_v16 = vpack.c.bf16 %v1567_v14, %v1564_v13  ;;  %1037 = vmatprep.subr.bf16.mxu1 %v1540_v5  ;;  %v1638_v34 = vld [vmem:[%s1517_s8 + $0xa0] sm:$0xff]  ;;  %v1641_v35 = vld [vmem:[%s1517_s8 + $0xa8] sm:$0xff] }
  0x6b   : > { %v252_v17 = vadd.s32 128, %v1551_v9  ;;  %v253_v18 = vadd.s32 136, %v1551_v9  ;;  %v237_v19 = vadd.s32 8, %v1551_v9  ;;  %vm269_vm1 = vcmp.ge.s32.totalorder %v1551_v9, %v1536_v4  ;;  %1038 = vmatpush3.bf16.msra.mxu1 %v1558_v11  ;;  %2345 = vst [vmem:[#allocation18_spill] sm:$0xff] %v1638_v34  ;;  %2346 = vst [vmem:[#allocation19_spill] sm:$0xff] %v1641_v35  ;;  %v1660_v39 = vld [vmem:[%s1517_s8 + $0x20] sm:$0xff] }
  0x6c   : > { %vm302_vm2 = vcmp.lt.s32.totalorder %v1551_v9, %v1554_v10  ;;  %v254_v20 = vadd.s32 144, %v1551_v9  ;;  %v255_v21 = vadd.s32 152, %v1551_v9  ;;  %v238_v22 = vadd.s32 16, %v1551_v9  ;;  %1039 = vmatprep.subr.bf16.mxu1 %v1571_v15  ;;  %2348 = vst [vmem:[#allocation21_spill] sm:$0xff] %v1660_v39  ;;  %v1663_v40 = vld [vmem:[%s1517_s8 + $0x28] sm:$0xff]  ;;  %v1701_v51 = vld [vmem:[%s1517_s8 + $0xb0] sm:$0xff] }
  0x6d   : > { %vm285_vm3 = vcmp.ge.s32.totalorder %v252_v17, %v1536_v4  ;;  %vm286_vm4 = vcmp.ge.s32.totalorder %v253_v18, %v1536_v4  ;;  %vm318_vm5 = vcmp.lt.s32.totalorder %v252_v17, %v1554_v10  ;;  %vm319_vm6 = vcmp.lt.s32.totalorder %v253_v18, %v1554_v10  ;;  %vm334_vm7 = vmand %vm269_vm1, %vm302_vm2  ;;  %2349 = vst [vmem:[#allocation22_spill] sm:$0xff] %v1663_v40  ;;  %v1704_v52 = vld [vmem:[%s1517_s8 + $0xb8] sm:$0xff]  ;;  %v1718_v55 = vld [vmem:[%s1517_s8 + $0x30] sm:$0xff] }
  0x6e   : > { %vm350_vm8 = vmand %vm285_vm3, %vm318_vm5  ;;  %vm270_vm9 = vcmp.ge.s32.totalorder %v237_v19, %v1536_v4  ;;  %vm303_vm10 = vcmp.lt.s32.totalorder %v237_v19, %v1554_v10  ;;  %v1597_v23 = vsel %vm334_vm7, %v1543_v6, 0.0  ;;  %vm287_vm11 = vcmp.ge.s32.totalorder %v254_v20, %v1536_v4  ;;  %2351 = vst [vmem:[#allocation24_spill] sm:$0xff] %v1701_v51  ;;  %v1721_v56 = vld [vmem:[%s1517_s8 + $0x38] sm:$0xff]  ;;  %v1759_v18 = vld [vmem:[%s1517_s8 + $0xc0] sm:$0xff] }
  0x6f   : > { %vm351_vm12 = vmand %vm286_vm4, %vm319_vm6  ;;  %v1601_v24 = vsel %vm350_vm8, %v1531_v1, 0.0  ;;  %vm288_vm13 = vcmp.ge.s32.totalorder %v255_v21, %v1536_v4  ;;  %vm320_vm14 = vcmp.lt.s32.totalorder %v254_v20, %v1554_v10  ;;  %vm321_vm15 = vcmp.lt.s32.totalorder %v255_v21, %v1554_v10  ;;  %1040 = vmatpush3.bf16.msra.mxu1 %v1575_v16  ;;  %2352 = vst [vmem:[#allocation25_spill] sm:$0xff] %v1704_v52  ;;  %v1762_v19 = vld [vmem:[%s1517_s8 + $0xc8] sm:$0xff] }
  0x70   : > { %v1608_v25 = vsel %vm351_vm12, %v1534_v2, 0.0  ;;  %vm335_vm0 = vmand %vm270_vm9, %vm303_vm10  ;;  %v239_v26 = vadd.s32 24, %v1551_v9  ;;  %vm271_vm1 = vcmp.ge.s32.totalorder %v238_v22, %v1536_v4  ;;  %vm304_vm2 = vcmp.lt.s32.totalorder %v238_v22, %v1554_v10  ;;  %2354 = vst [vmem:[#allocation27_spill] sm:$0xff] %v1718_v55  ;;  %v1776_v22 = vld [vmem:[%s1517_s8 + $0x40] sm:$0xff] }
  0x71   : > { %v1615_v27 = vpack.c.bf16 %v1608_v25, %v1601_v24  ;;  %v1618_v28 = vsel %vm335_vm0, %v1546_v7, 0.0  ;;  %vm352_vm3 = vmand %vm287_vm11, %vm320_vm14  ;;  %v256_v29 = vadd.s32 160, %v1551_v9  ;;  %v257_v30 = vadd.s32 168, %v1551_v9  ;;  %2355 = vst [vmem:[#allocation28_spill] sm:$0xff] %v1721_v56 }
  0x72   : > { %v1624_v31 = vpack.c.bf16 %v1618_v28, %v1597_v23  ;;  %vm353_vm4 = vmand %vm288_vm13, %vm321_vm15  ;;  %v1629_v32 = vsel %vm352_vm3, %v1549_v8, 0.0  ;;  %vm272_vm5 = vcmp.ge.s32.totalorder %v239_v26, %v1536_v4  ;;  %vm305_vm6 = vcmp.lt.s32.totalorder %v239_v26, %v1554_v10  ;;  %2357 = vst [vmem:[#allocation30_spill] sm:$0xff] %v1759_v18  ;;  %v1779_v26 = vld [vmem:[%s1517_s8 + $0x48] sm:$0xff] }
  0x73   : > { %606 = vxpose.xlu0.c.b16.start [1/8] (narrow) %v1615_v27, 64  ;;  %v1635_v33 = vsel %vm353_vm4, %v1561_v12, 0.0  ;;  %vm336_vm7 = vmand %vm271_vm1, %vm304_vm2  ;;  %vm289_vm8 = vcmp.ge.s32.totalorder %v256_v29, %v1536_v4  ;;  %vm290_vm9 = vcmp.ge.s32.totalorder %v257_v30, %v1536_v4  ;;  %vm322_vm10 = vcmp.lt.s32.totalorder %v256_v29, %v1554_v10  ;;  %2358 = vst [vmem:[#allocation31_spill] sm:$0xff] %v1762_v19 }
  0x74   : > { %590 = vxpose.xlu1.c.b16.start [1/8] (narrow) %v1624_v31, 64  ;;  %v1649_v36 = vpack.c.bf16 %v1635_v33, %v1629_v32  ;;  %vm337_vm11 = vmand %vm272_vm5, %vm305_vm6  ;;  %v1652_v37 = vsel %vm336_vm7, %v1564_v13, 0.0  ;;  %vm323_vm12 = vcmp.lt.s32.totalorder %v257_v30, %v1554_v10  ;;  %v1657_v38 = vpack.c.bf16 %v1641_v35, %v1638_v34  ;;  %2360 = vst [vmem:[#allocation33_spill] sm:$0xff] %v1776_v22 }
  0x75   : > { %v1666_v41 = vsel %vm337_vm11, %v1567_v14, 0.0  ;;  %vm354_vm13 = vmand %vm289_vm8, %vm322_vm10  ;;  %v240_v42 = vadd.s32 32, %v1551_v9  ;;  %v241_v43 = vadd.s32 40, %v1551_v9  ;;  %v1672_v44 = vpack.c.bf16 %v1663_v40, %v1660_v39  ;;  %2361 = vst [vmem:[#allocation34_spill] sm:$0xff] %v1779_v26 }
  0x76   : > { %2347 = vst [vmem:[#allocation20_spill] sm:$0xff] %v1657_v38  ;;  %v1676_v45 = vpack.c.bf16 %v1666_v41, %v1652_v37  ;;  %vm355_vm14 = vmand %vm290_vm9, %vm323_vm12  ;;  %v1681_v46 = vsel %vm354_vm13, %v1638_v34, 0.0  ;;  %v258_v47 = vadd.s32 176, %v1551_v9  ;;  %v259_v48 = vadd.s32 184, %v1551_v9  ;;  %1041 = vmatprep.subr.bf16.mxu1 %v1657_v38 }
  0x77   : > { %2350 = vst [vmem:[#allocation23_spill] sm:$0xff] %v1672_v44  ;;  %607 = vxpose.xlu0.c.b16.cont [2/8] (narrow) %v1649_v36, 64  ;;  %v1688_v49 = vsel %vm355_vm14, %v1641_v35, 0.0  ;;  %vm273_vm15 = vcmp.ge.s32.totalorder %v240_v42, %v1536_v4  ;;  %vm274_vm0 = vcmp.ge.s32.totalorder %v241_v43, %v1536_v4  ;;  %vm306_vm1 = vcmp.lt.s32.totalorder %v240_v42, %v1554_v10 }
  0x78   : > { %1042 = vmatpush3.bf16.msra.mxu1 %v1672_v44  ;;  %591 = vxpose.xlu1.c.b16.cont [2/8] (narrow) %v1676_v45, 64  ;;  %v1697_v50 = vpack.c.bf16 %v1688_v49, %v1681_v46  ;;  %vm307_vm2 = vcmp.lt.s32.totalorder %v241_v43, %v1554_v10  ;;  %vm338_vm3 = vmand %vm273_vm15, %vm306_vm1  ;;  %vm291_vm4 = vcmp.ge.s32.totalorder %v258_v47, %v1536_v4  ;;  %v242_v58 = vadd.s32 48, %v1551_v9 }
  0x79   : > { %vm292_vm5 = vcmp.ge.s32.totalorder %v259_v48, %v1536_v4  ;;  %vm339_vm6 = vmand %vm274_vm0, %vm307_vm2  ;;  %v1709_v53 = vsel %vm338_vm3, %v1660_v39, 0.0  ;;  %vm324_vm7 = vcmp.lt.s32.totalorder %v258_v47, %v1554_v10  ;;  %vm325_vm8 = vcmp.lt.s32.totalorder %v259_v48, %v1554_v10 }
  0x7a   : > { %v1715_v54 = vpack.c.bf16 %v1704_v52, %v1701_v51  ;;  %v1724_v57 = vsel %vm339_vm6, %v1663_v40, 0.0  ;;  %vm356_vm9 = vmand %vm291_vm4, %vm324_vm7  ;;  %v243_v59 = vadd.s32 56, %v1551_v9  ;;  %v1730_v60 = vpack.c.bf16 %v1721_v56, %v1718_v55 }
  0x7b   : > { %608 = vxpose.xlu0.c.b16.cont [3/8] (narrow) %v1697_v50, 64  ;;  %v1735_v61 = vpack.c.bf16 %v1724_v57, %v1709_v53  ;;  %vm357_vm10 = vmand %vm292_vm5, %vm325_vm8  ;;  %v1740_v62 = vsel %vm356_vm9, %v1701_v51, 0.0  ;;  %v260_v63 = vadd.s32 192, %v1551_v9  ;;  %v261_v0 = vadd.s32 200, %v1551_v9 }
  0x7c   : > { %2353 = vst [vmem:[#allocation26_spill] sm:$0xff] %v1715_v54  ;;  %2356 = vst [vmem:[#allocation29_spill] sm:$0xff] %v1730_v60  ;;  %1043 = vmatprep.subr.bf16.mxu1 %v1715_v54  ;;  %v1746_v3 = vsel %vm357_vm10, %v1704_v52, 0.0  ;;  %vm275_vm11 = vcmp.ge.s32.totalorder %v242_v58, %v1536_v4  ;;  %vm276_vm12 = vcmp.ge.s32.totalorder %v243_v59, %v1536_v4  ;;  %v244_v30 = vadd.s32 64, %v1551_v9 }
  0x7d   : > { %vm308_vm13 = vcmp.lt.s32.totalorder %v242_v58, %v1554_v10  ;;  %1044 = vmatpush3.bf16.msra.mxu1 %v1730_v60  ;;  %592 = vxpose.xlu1.c.b16.cont [3/8] (narrow) %v1735_v61, 64  ;;  %v1755_v17 = vpack.c.bf16 %v1746_v3, %v1740_v62  ;;  %vm309_vm14 = vcmp.lt.s32.totalorder %v243_v59, %v1554_v10  ;;  %v245_v42 = vadd.s32 72, %v1551_v9 }
  0x7e   : > { %vm340_vm15 = vmand %vm275_vm11, %vm308_vm13  ;;  %vm293_vm0 = vcmp.ge.s32.totalorder %v260_v63, %v1536_v4  ;;  %vm294_vm1 = vcmp.ge.s32.totalorder %v261_v0, %v1536_v4  ;;  %vm326_vm3 = vcmp.lt.s32.totalorder %v260_v63, %v1554_v10  ;;  %vm327_vm4 = vcmp.lt.s32.totalorder %v261_v0, %v1554_v10 }
  0x7f   : > { %vm341_vm2 = vmand %vm276_vm12, %vm309_vm14  ;;  %v1767_v20 = vsel %vm340_vm15, %v1718_v55, 0.0  ;;  %v1773_v21 = vpack.c.bf16 %v1762_v19, %v1759_v18  ;;  %609 = vxpose.xlu0.c.b16.cont [4/8] (narrow) %v1755_v17, 64  ;;  %v1789_v43 = vpack.c.bf16 %v1779_v26, %v1776_v22  ;;  %v262_v58 = vadd.s32 208, %v1551_v9 }
  0x80   : > { %v1783_v29 = vsel %vm341_vm2, %v1721_v56, 0.0  ;;  %vm358_vm5 = vmand %vm293_vm0, %vm326_vm3  ;;  %v263_v59 = vadd.s32 216, %v1551_v9  ;;  %vm277_vm7 = vcmp.ge.s32.totalorder %v244_v30, %v1536_v4  ;;  %vm278_vm8 = vcmp.ge.s32.totalorder %v245_v42, %v1536_v4  ;;  %v1837_v56 = vld [vmem:[%s1517_s8 + $0x58] sm:$0xff] }
  0x81   : > { %2359 = vst [vmem:[#allocation32_spill] sm:$0xff] %v1773_v21  ;;  %2362 = vst [vmem:[#allocation35_spill] sm:$0xff] %v1789_v43  ;;  %v1793_v47 = vpack.c.bf16 %v1783_v29, %v1767_v20  ;;  %v1798_v48 = vsel %vm358_vm5, %v1759_v18, 0.0  ;;  %1045 = vmatprep.subr.bf16.mxu1 %v1773_v21  ;;  %vm310_vm9 = vcmp.lt.s32.totalorder %v244_v30, %v1554_v10  ;;  %v1820_v18 = vld [vmem:[%s1517_s8 + $0xd8] sm:$0xff]  ;;  %v264_v51 = vadd.s32 224, %v1551_v9 }
  0x82   : > { %vm359_vm6 = vmand %vm294_vm1, %vm327_vm4  ;;  %1046 = vmatpush3.bf16.msra.mxu1 %v1789_v43  ;;  %vm311_vm10 = vcmp.lt.s32.totalorder %v245_v42, %v1554_v10  ;;  %2364 = vst [vmem:[#allocation37_spill] sm:$0xff] %v1820_v18  ;;  %vm295_vm12 = vcmp.ge.s32.totalorder %v262_v58, %v1536_v4  ;;  %vm296_vm13 = vcmp.ge.s32.totalorder %v263_v59, %v1536_v4  ;;  %v1834_v43 = vld [vmem:[%s1517_s8 + $0x50] sm:$0xff]  ;;  %v265_v60 = vadd.s32 232, %v1551_v9 }
  0x83   : > { %v1804_v63 = vsel %vm359_vm6, %v1762_v19, 0.0  ;;  %593 = vxpose.xlu1.c.b16.cont [4/8] (narrow) %v1793_v47, 64  ;;  %vm342_vm11 = vmand %vm277_vm7, %vm310_vm9  ;;  %v1817_v19 = vld [vmem:[%s1517_s8 + $0xd0] sm:$0xff]  ;;  %vm328_vm15 = vcmp.lt.s32.totalorder %v262_v58, %v1554_v10  ;;  %vm329_vm0 = vcmp.lt.s32.totalorder %v263_v59, %v1554_v10  ;;  %2366 = vst [vmem:[#allocation39_spill] sm:$0xff] %v1834_v43  ;;  %v247_v58 = vadd.s32 88, %v1551_v9 }
  0x84   : > { %v1813_v0 = vpack.c.bf16 %v1804_v63, %v1798_v48  ;;  %2363 = vst [vmem:[#allocation36_spill] sm:$0xff] %v1817_v19  ;;  %vm343_vm14 = vmand %vm278_vm8, %vm311_vm10  ;;  %v1825_v30 = vsel %vm342_vm11, %v1776_v22, 0.0  ;;  %v1831_v42 = vpack.c.bf16 %v1820_v18, %v1817_v19  ;;  %v246_v22 = vadd.s32 80, %v1551_v9 }
  0x85   : > { %2367 = vst [vmem:[#allocation40_spill] sm:$0xff] %v1837_v56  ;;  %v1841_v55 = vsel %vm343_vm14, %v1779_v26, 0.0  ;;  %vm360_vm1 = vmand %vm295_vm12, %vm328_vm15  ;;  %v1847_v52 = vpack.c.bf16 %v1837_v56, %v1834_v43  ;;  %vm280_vm4 = vcmp.ge.s32.totalorder %v247_v58, %v1536_v4  ;;  %vm313_vm6 = vcmp.lt.s32.totalorder %v247_v58, %v1554_v10 }
  0x86   : > { %2365 = vst [vmem:[#allocation38_spill] sm:$0xff] %v1831_v42  ;;  %610 = vxpose.xlu0.c.b16.cont [5/8] (narrow) %v1813_v0, 64  ;;  %v1851_v21 = vpack.c.bf16 %v1841_v55, %v1825_v30  ;;  %vm361_vm2 = vmand %vm296_vm13, %vm329_vm0  ;;  %v1856_v26 = vsel %vm360_vm1, %v1817_v19, 0.0  ;;  %1047 = vmatprep.subr.bf16.mxu1 %v1831_v42  ;;  %vm279_vm3 = vcmp.ge.s32.totalorder %v246_v22, %v1536_v4  ;;  %v1878_v19 = vld [vmem:[%s1517_s8 + $0xe8] sm:$0xff]  ;;  %v266_v34 = vadd.s32 240, %v1551_v9 }
  0x87   : > { %2368 = vst [vmem:[#allocation41_spill] sm:$0xff] %v1847_v52  ;;  %v1862_v40 = vsel %vm361_vm2, %v1820_v18, 0.0  ;;  %vm312_vm5 = vcmp.lt.s32.totalorder %v246_v22, %v1554_v10  ;;  %1048 = vmatpush3.bf16.msra.mxu1 %v1847_v52  ;;  %v1875_v18 = vld [vmem:[%s1517_s8 + $0xe0] sm:$0xff]  ;;  %2370 = vst [vmem:[#allocation43_spill] sm:$0xff] %v1878_v19  ;;  %vm297_vm8 = vcmp.ge.s32.totalorder %v264_v51, %v1536_v4  ;;  %v1895_v42 = vld [vmem:[%s1517_s8 + $0x68] sm:$0xff]  ;;  %v267_v14 = vadd.s32 248, %v1551_v9 }
  0x88   : > { %594 = vxpose.xlu1.c.b16.cont [5/8] (narrow) %v1851_v21, 64  ;;  %v1871_v59 = vpack.c.bf16 %v1862_v40, %v1856_v26  ;;  %vm344_vm7 = vmand %vm279_vm3, %vm312_vm5  ;;  %2369 = vst [vmem:[#allocation42_spill] sm:$0xff] %v1875_v18  ;;  %vm298_vm9 = vcmp.ge.s32.totalorder %v265_v60, %v1536_v4  ;;  %vm330_vm11 = vcmp.lt.s32.totalorder %v264_v51, %v1554_v10  ;;  %v1892_v52 = vld [vmem:[%s1517_s8 + $0x60] sm:$0xff]  ;;  %v249_v51 = vadd.s32 104, %v1551_v9 }
  0x89   : > { %vm345_vm10 = vmand %vm280_vm4, %vm313_vm6  ;;  %v1883_v22 = vsel %vm344_vm7, %v1834_v43, 0.0  ;;  %vm331_vm12 = vcmp.lt.s32.totalorder %v265_v60, %v1554_v10  ;;  %v1889_v58 = vpack.c.bf16 %v1878_v19, %v1875_v18  ;;  %2372 = vst [vmem:[#allocation45_spill] sm:$0xff] %v1892_v52  ;;  %v248_v43 = vadd.s32 96, %v1551_v9 }
  0x8a   : > { %2373 = vst [vmem:[#allocation46_spill] sm:$0xff] %v1895_v42  ;;  %611 = vxpose.xlu0.c.b16.cont [6/8] (narrow) %v1871_v59, 64  ;;  %v1899_v54 = vsel %vm345_vm10, %v1837_v56, 0.0  ;;  %vm362_vm13 = vmand %vm297_vm8, %vm330_vm11  ;;  %v1905_v39 = vpack.c.bf16 %v1895_v42, %v1892_v52  ;;  %vm282_vm0 = vcmp.ge.s32.totalorder %v249_v51, %v1536_v4  ;;  %vm315_vm2 = vcmp.lt.s32.totalorder %v249_v51, %v1554_v10 }
  0x8b   : > { %2371 = vst [vmem:[#allocation44_spill] sm:$0xff] %v1889_v58  ;;  %v1909_v35 = vpack.c.bf16 %v1899_v54, %v1883_v22  ;;  %vm363_vm14 = vmand %vm298_vm9, %vm331_vm12  ;;  %v1914_v56 = vsel %vm362_vm13, %v1875_v18, 0.0  ;;  %1049 = vmatprep.subr.bf16.mxu1 %v1889_v58  ;;  %vm281_vm15 = vcmp.ge.s32.totalorder %v248_v43, %v1536_v4  ;;  %vm314_vm1 = vcmp.lt.s32.totalorder %v248_v43, %v1554_v10  ;;  %v1936_v18 = vld [vmem:[%s1517_s8 + $0xf8] sm:$0xff] }
  0x8c   : > { %2374 = vst [vmem:[#allocation47_spill] sm:$0xff] %v1905_v39  ;;  %v1920_v44 = vsel %vm363_vm14, %v1878_v19, 0.0  ;;  %1050 = vmatpush3.bf16.msra.mxu1 %v1905_v39  ;;  %vm346_vm3 = vmand %vm281_vm15, %vm314_vm1  ;;  %v1933_v19 = vld [vmem:[%s1517_s8 + $0xf0] sm:$0xff]  ;;  %vm299_vm4 = vcmp.ge.s32.totalorder %v266_v34, %v1536_v4  ;;  %vm300_vm5 = vcmp.ge.s32.totalorder %v267_v14, %v1536_v4  ;;  %vm332_vm7 = vcmp.lt.s32.totalorder %v266_v34, %v1554_v10  ;;  %v1953_v58 = vld [vmem:[%s1517_s8 + $0x78] sm:$0xff] }
  0x8d   : > { %595 = vxpose.xlu1.c.b16.cont [6/8] (narrow) %v1909_v35, 64  ;;  %v1929_v60 = vpack.c.bf16 %v1920_v44, %v1914_v56  ;;  %2375 = vst [vmem:[#allocation48_spill] sm:$0xff] %v1933_v19  ;;  %2376 = vst [vmem:[#allocation49_spill] sm:$0xff] %v1936_v18  ;;  %v1941_v43 = vsel %vm346_vm3, %v1892_v52, 0.0  ;;  %vm333_vm8 = vcmp.lt.s32.totalorder %v267_v14, %v1554_v10  ;;  %v1950_v39 = vld [vmem:[%s1517_s8 + $0x70] sm:$0xff]  ;;  %v250_v52 = vadd.s32 112, %v1551_v9 }
  0x8e   : > { %vm347_vm6 = vmand %vm282_vm0, %vm315_vm2  ;;  %v1947_v51 = vpack.c.bf16 %v1936_v18, %v1933_v19  ;;  %2378 = vst [vmem:[#allocation51_spill] sm:$0xff] %v1950_v39  ;;  %v251_v34 = vadd.s32 120, %v1551_v9  ;;  %v1963_v12 = vpack.c.bf16 %v1953_v58, %v1950_v39  ;;  %v431_v7 = vunpack.c.h.bf16 %v1615_v27 }
  0x8f   : > { %2379 = vst [vmem:[#allocation52_spill] sm:$0xff] %v1953_v58  ;;  %612 = vxpose.xlu0.c.b16.cont [7/8] (narrow) %v1929_v60, 64  ;;  %v1957_v13 = vsel %vm347_vm6, %v1895_v42, 0.0  ;;  %vm364_vm9 = vmand %vm299_vm4, %vm332_vm7  ;;  %v430_v42 = vunpack.c.l.bf16 %v1615_v27  ;;  %vm283_vm11 = vcmp.ge.s32.totalorder %v250_v52, %v1536_v4  ;;  %vm316_vm13 = vcmp.lt.s32.totalorder %v250_v52, %v1554_v10 }
  0x90   : > { %2377 = vst [vmem:[#allocation50_spill] sm:$0xff] %v1947_v51  ;;  %2380 = vst [vmem:[#allocation53_spill] sm:$0xff] %v1963_v12  ;;  %v1967_v38 = vpack.c.bf16 %v1957_v13, %v1941_v43  ;;  %v1972_v8 = vsel %vm364_vm9, %v1933_v19, 0.0  ;;  %1051 = vmatprep.subr.bf16.mxu1 %v1947_v51  ;;  %vm284_vm12 = vcmp.ge.s32.totalorder %v251_v34, %v1536_v4  ;;  %v414_v52 = vunpack.c.l.bf16 %v1624_v31 }
  0x91   : > { %vm365_vm10 = vmand %vm300_vm5, %vm333_vm8  ;;  %1052 = vmatpush3.bf16.msra.mxu1 %v1963_v12  ;;  %vm317_vm14 = vcmp.lt.s32.totalorder %v251_v34, %v1554_v10  ;;  %v462_v27 = vsub.f32 %v1601_v24, %v430_v42  ;;  %v415_v19 = vunpack.c.h.bf16 %v1624_v31  ;;  %v432_v12 = vunpack.c.l.bf16 %v1649_v36 }
  0x92   : > { %v1978_v9 = vsel %vm365_vm10, %v1936_v18, 0.0  ;;  %596 = vxpose.xlu1.c.b16.cont [7/8] (narrow) %v1967_v38, 64  ;;  %vm348_vm15 = vmand %vm283_vm11, %vm316_vm13  ;;  %v463_v18 = vsub.f32 %v1608_v25, %v431_v7  ;;  %1117 = vmatprep.subr.bf16.mxu1 %v1540_v5  ;;  %v433_v7 = vunpack.c.h.bf16 %v1649_v36  ;;  %v416_v25 = vunpack.c.l.bf16 %v1676_v45 }
  0x93   : > { %v1987_v14 = vpack.c.bf16 %v1978_v9, %v1972_v8  ;;  %vm349_vm0 = vmand %vm284_vm12, %vm317_vm14  ;;  %v1993_v4 = vsel %vm348_vm15, %v1950_v39, 0.0  ;;  %v446_v31 = vsub.f32 %v1597_v23, %v414_v52  ;;  %v447_v34 = vsub.f32 %v1618_v28, %v415_v19 }
  0x94   : > { %2381 = vst [vmem:[#allocation54_spill] sm:$0xff] %v1993_v4  ;;  %v2001_v10 = vsel %vm349_vm0, %v1953_v58, 0.0  ;;  %v486_v24 = vpack.c.bf16 %v463_v18, %v462_v27  ;;  %v464_v39 = vsub.f32 %v1629_v32, %v432_v12  ;;  %v465_v51 = vsub.f32 %v1635_v33, %v433_v7 }
  0x95   : > { %613 = vxpose.xlu0.c.b16.end [8/8] (narrow) %v1987_v14, 64  ;;  %2382 = vst [vmem:[#allocation55_spill] sm:$0xff] %v2001_v10  ;;  %v2007_v42 = vpack.c.bf16 %v2001_v10, %v1993_v4  ;;  %v417_v58 = vunpack.c.h.bf16 %v1676_v45  ;;  %v448_v18 = vsub.f32 %v1652_v37, %v416_v25  ;;  %v434_v36 = vunpack.c.l.bf16 %v1697_v50 }
  0x96   : > { %v478_v27 = vpack.c.bf16 %v447_v34, %v446_v31  ;;  %v435_v10 = vunpack.c.h.bf16 %v1697_v50  ;;  %v418_v4 = vunpack.c.l.bf16 %v1735_v61  ;;  %v419_v23 = vunpack.c.h.bf16 %v1735_v61 }
  0x97   : > { %597 = vxpose.xlu1.c.b16.end [8/8] (narrow) %v2007_v42, 64  ;;  %v487_v28 = vpack.c.bf16 %v465_v51, %v464_v39  ;;  %v449_v12 = vsub.f32 %v1666_v41, %v417_v58  ;;  %v466_v32 = vsub.f32 %v1681_v46, %v434_v36  ;;  %v436_v33 = vunpack.c.l.bf16 %v1755_v17 }
  0x98   : > { %v467_v37 = vsub.f32 %v1688_v49, %v435_v10  ;;  %v450_v45 = vsub.f32 %v1709_v53, %v418_v4  ;;  %v451_v19 = vsub.f32 %v1724_v57, %v419_v23  ;;  %v437_v50 = vunpack.c.h.bf16 %v1755_v17 }
  0x99   : > { %768 = vxpose.xlu0.c.b16.start [1/8] (narrow) %v486_v24, 64  ;;  %v468_v52 = vsub.f32 %v1740_v62, %v436_v33  ;;  %v420_v61 = vunpack.c.l.bf16 %v1793_v47  ;;  %v421_v39 = vunpack.c.h.bf16 %v1793_v47  ;;  %v479_v41 = vpack.c.bf16 %v449_v12, %v448_v18 }
  0x9a   : > { %v469_v46 = vsub.f32 %v1746_v3, %v437_v50  ;;  %v438_v58 = vunpack.c.l.bf16 %v1813_v0  ;;  %v526_v49 = vunpack.c.l.bf16 %v1540_v5  ;;  %v488_v53 = vpack.c.bf16 %v467_v37, %v466_v32 }
  0x9b   : > { %752 = vxpose.xlu1.c.b16.start [1/8] (narrow) %v478_v27, 64  ;;  %v480_v51 = vpack.c.bf16 %v451_v19, %v450_v45  ;;  %v439_v57 = vunpack.c.h.bf16 %v1813_v0  ;;  %v422_v17 = vunpack.c.l.bf16 %v1851_v21  ;;  %v452_v62 = vsub.f32 %v1767_v20, %v420_v61 }
  0x9c   : > { %v453_v4 = vsub.f32 %v1783_v29, %v421_v39  ;;  %v423_v47 = vunpack.c.h.bf16 %v1851_v21  ;;  %v440_v10 = vunpack.c.l.bf16 %v1871_v59  ;;  %v489_v3 = vpack.c.bf16 %v469_v46, %v468_v52  ;;  %v2383_v52 = vld [vmem:[#allocation13_spill] sm:$0xff]  ;;  %v2384_v39 = vld [vmem:[#allocation14_spill] sm:$0xff]  ;;  %v2385_v46 = vld [vmem:[#allocation20_spill] sm:$0xff] }
  0x9d   : > { %769 = vxpose.xlu0.c.b16.cont [2/8] (narrow) %v487_v28, 64  ;;  %v470_v24 = vsub.f32 %v1798_v48, %v438_v58  ;;  %v471_v7 = vsub.f32 %v1804_v63, %v439_v57  ;;  %v441_v25 = vunpack.c.h.bf16 %v1871_v59  ;;  %v454_v0 = vsub.f32 %v1825_v30, %v422_v17 }
  0x9e   : > { %v455_v31 = vsub.f32 %v1841_v55, %v423_v47  ;;  %v424_v20 = vunpack.c.l.bf16 %v1909_v35  ;;  %v425_v29 = vunpack.c.h.bf16 %v1909_v35  ;;  %v472_v21 = vsub.f32 %v1856_v26, %v440_v10  ;;  %v2389_v47 = vld [vmem:[#allocation17_spill] sm:$0xff] }
  0x9f   : > { %753 = vxpose.xlu1.c.b16.cont [2/8] (narrow) %v479_v41, 64  ;;  %v473_v34 = vsub.f32 %v1862_v40, %v441_v25  ;;  %v442_v48 = vunpack.c.l.bf16 %v1929_v60  ;;  %v443_v63 = vunpack.c.h.bf16 %v1929_v60  ;;  %v426_v55 = vunpack.c.l.bf16 %v1967_v38 }
  0xa0   : > { %v2051_v59 = vsub.f32 %v1883_v22, %v424_v20  ;;  %v2054_v30 = vsub.f32 %v1899_v54, %v425_v29  ;;  %v527_v18 = vunpack.c.h.bf16 %v1540_v5  ;;  %v427_v40 = vunpack.c.h.bf16 %v1967_v38  ;;  %v2392_v20 = vld [vmem:[#allocation21_spill] sm:$0xff] }
  0xa1   : > { %770 = vxpose.xlu0.c.b16.cont [3/8] (narrow) %v488_v53, 64  ;;  %v2059_v35 = vsub.f32 %v1914_v56, %v442_v48  ;;  %v2062_v26 = vsub.f32 %v1920_v44, %v443_v63  ;;  %v481_v60 = vpack.c.bf16 %v453_v4, %v452_v62  ;;  %v490_v36 = vpack.c.bf16 %v471_v7, %v470_v24  ;;  %v2394_v63 = vld [vmem:[#allocation22_spill] sm:$0xff] }
  0xa2   : > { %v444_v22 = vunpack.c.l.bf16 %v1987_v14  ;;  %v445_v54 = vunpack.c.h.bf16 %v1987_v14  ;;  %v482_v27 = vpack.c.bf16 %v455_v31, %v454_v0  ;;  %v491_v23 = vpack.c.bf16 %v473_v34, %v472_v21  ;;  %v2391_v0 = vld [vmem:[#allocation19_spill] sm:$0xff]  ;;  %v2393_v21 = vld [vmem:[#allocation26_spill] sm:$0xff] }
  0xa3   : > { %754 = vxpose.xlu1.c.b16.cont [3/8] (narrow) %v480_v51, 64  ;;  %v2068_v28 = vsub.f32 %v1941_v43, %v426_v55  ;;  %v2071_v56 = vsub.f32 %v1957_v13, %v427_v40  ;;  %v483_v44 = vpack.c.bf16 %v2054_v30, %v2051_v59  ;;  %v492_v38 = vpack.c.bf16 %v2062_v26, %v2059_v35  ;;  %v2387_v51 = vld [vmem:[#allocation16_spill] sm:$0xff]  ;;  %v2395_v55 = vld [vmem:[#allocation29_spill] sm:$0xff] }
  0xa4   : > { %v558_v12 = vsub.f32 %v1531_v1, %v526_v49  ;;  %v559_v32 = vsub.f32 %v1534_v2, %v527_v18  ;;  %v2080_v14 = vsub.f32 %v1972_v8, %v444_v22  ;;  %v428_v33 = vunpack.c.l.bf16 %v2007_v42  ;;  %v2386_v49 = vld [vmem:[#allocation15_spill] sm:$0xff]  ;;  %v2396_v26 = vld [vmem:[#allocation24_spill] sm:$0xff] }
  0xa5   : > { %771 = vxpose.xlu0.c.b16.cont [4/8] (narrow) %v489_v3, 64  ;;  %v429_v43 = vunpack.c.h.bf16 %v2007_v42  ;;  %v510_v13 = vunpack.c.l.bf16 %v1558_v11  ;;  %v477_v37 = vsub.f32 %v1978_v9, %v445_v54  ;;  %v511_v19 = vunpack.c.h.bf16 %v1558_v11  ;;  %v2390_v3 = vld [vmem:[#allocation18_spill] sm:$0xff] }
  0xa6   : > { %v582_v45 = vpack.c.bf16 %v559_v32, %v558_v12  ;;  %v528_v50 = vunpack.c.l.bf16 %v1571_v15  ;;  %v484_v1 = vpack.c.bf16 %v2071_v56, %v2068_v28  ;;  %v529_v8 = vunpack.c.h.bf16 %v1571_v15  ;;  %v2398_v54 = vld [vmem:[#allocation54_spill] sm:$0xff]  ;;  %v2400_v56 = vld [vmem:[#allocation25_spill] sm:$0xff] }
  0xa7   : > { %755 = vxpose.xlu1.c.b16.cont [4/8] (narrow) %v481_v60, 64  ;;  %v542_v2 = vsub.f32 %v1543_v6, %v510_v13  ;;  %v512_v42 = vunpack.c.l.bf16 %v1575_v16  ;;  %v543_v61 = vsub.f32 %v2383_v52, %v511_v19  ;;  %v513_v41 = vunpack.c.h.bf16 %v1575_v16  ;;  %v2388_v6 = vld [vmem:[#allocation23_spill] sm:$0xff] }
  0xa8   : > { %997 = vmatprep.subr.bf16.mxu0 %v582_v45  ;;  %v560_v9 = vsub.f32 %v2384_v39, %v528_v50  ;;  %v530_v58 = vunpack.c.l.bf16 %v2385_v46  ;;  %v561_v53 = vsub.f32 %v2386_v49, %v529_v8  ;;  %v531_v17 = vunpack.c.h.bf16 %v2385_v46  ;;  %v2401_v19 = vld [vmem:[#allocation27_spill] sm:$0xff]  ;;  %v2407_v49 = vld [vmem:[#allocation41_spill] sm:$0xff] }
  0xa9   : > { %772 = vxpose.xlu0.c.b16.cont [5/8] (narrow) %v490_v36, 64  ;;  %v544_v57 = vsub.f32 %v2387_v51, %v512_v42  ;;  %v514_v62 = vunpack.c.l.bf16 %v2388_v6  ;;  %v574_v4 = vpack.c.bf16 %v543_v61, %v542_v2  ;;  %v545_v10 = vsub.f32 %v2389_v47, %v513_v41  ;;  %v2397_v36 = vld [vmem:[#allocation32_spill] sm:$0xff]  ;;  %v2403_v42 = vld [vmem:[#allocation35_spill] sm:$0xff] }
  0xaa   : > { %v562_v24 = vsub.f32 %v2390_v3, %v530_v58  ;;  %v515_v7 = vunpack.c.h.bf16 %v2388_v6  ;;  %v583_v25 = vpack.c.bf16 %v561_v53, %v560_v9  ;;  %v563_v31 = vsub.f32 %v2391_v0, %v531_v17  ;;  %v2402_v2 = vld [vmem:[#allocation28_spill] sm:$0xff]  ;;  %v2405_v9 = vld [vmem:[#allocation30_spill] sm:$0xff]  ;;  %v2406_v41 = vld [vmem:[#allocation31_spill] sm:$0xff] }
  0xab   : > { %756 = vxpose.xlu1.c.b16.cont [5/8] (narrow) %v482_v27, 64  ;;  %v546_v29 = vsub.f32 %v2392_v20, %v514_v62  ;;  %v532_v34 = vunpack.c.l.bf16 %v2393_v21  ;;  %998 = vmatpush3.bf16.msra.mxu0 %v574_v4  ;;  %v575_v48 = vpack.c.bf16 %v545_v10, %v544_v57  ;;  %v533_v30 = vunpack.c.h.bf16 %v2393_v21  ;;  %v2408_v57 = vld [vmem:[#allocation33_spill] sm:$0xff]  ;;  %v2409_v62 = vld [vmem:[#allocation34_spill] sm:$0xff]  ;;  %v2410_v47 = vld [vmem:[#allocation36_spill] sm:$0xff] }
  0xac   : > { %v547_v59 = vsub.f32 %v2394_v63, %v515_v7  ;;  %v516_v18 = vunpack.c.l.bf16 %v2395_v55  ;;  %999 = vmatprep.subr.bf16.mxu0 %v583_v25  ;;  %v584_v35 = vpack.c.bf16 %v563_v31, %v562_v24  ;;  %v517_v60 = vunpack.c.h.bf16 %v2395_v55  ;;  %v2411_v3 = vld [vmem:[#allocation37_spill] sm:$0xff]  ;;  %v2412_v25 = vld [vmem:[#allocation44_spill] sm:$0xff]  ;;  %v2413_v31 = vld [vmem:[#allocation39_spill] sm:$0xff] }
  0xad   : > { %773 = vxpose.xlu0.c.b16.cont [6/8] (narrow) %v491_v23, 64  ;;  %v564_v40 = vsub.f32 %v2396_v26, %v532_v34  ;;  %v534_v22 = vunpack.c.l.bf16 %v2397_v36  ;;  %v460_v27 = vsub.f32 %v2398_v54, %v428_v33  ;;  %v2399_v23 = vld [vmem:[#allocation55_spill] sm:$0xff]  ;;  %v565_v12 = vsub.f32 %v2400_v56, %v533_v30  ;;  %v2404_v33 = vld [vmem:[#allocation38_spill] sm:$0xff] }
  0xae   : > { %v461_v28 = vsub.f32 %v2399_v23, %v429_v43  ;;  %v535_v32 = vunpack.c.h.bf16 %v2397_v36  ;;  %v493_v13 = vpack.c.bf16 %v477_v37, %v2080_v14  ;;  %v576_v45 = vpack.c.bf16 %v547_v59, %v546_v29  ;;  %v2414_v29 = vld [vmem:[#allocation40_spill] sm:$0xff]  ;;  %v2415_v59 = vld [vmem:[#allocation47_spill] sm:$0xff] }
  0xaf   : > { %757 = vxpose.xlu1.c.b16.cont [6/8] (narrow) %v483_v44, 64  ;;  %v548_v50 = vsub.f32 %v2401_v19, %v516_v18  ;;  %v549_v8 = vsub.f32 %v2402_v2, %v517_v60  ;;  %1000 = vmatpush3.bf16.msra.mxu0 %v575_v48  ;;  %v518_v52 = vunpack.c.l.bf16 %v2403_v42  ;;  %v519_v44 = vunpack.c.h.bf16 %v2403_v42  ;;  %v2422_v2 = vld [vmem:[#allocation48_spill] sm:$0xff] }
  0xb0   : > { %v536_v61 = vunpack.c.l.bf16 %v2404_v33  ;;  %v537_v43 = vunpack.c.h.bf16 %v2404_v33  ;;  %1001 = vmatprep.subr.bf16.mxu0 %v584_v35  ;;  %v585_v39 = vpack.c.bf16 %v565_v12, %v564_v40  ;;  %v567_v14 = vsub.f32 %v2406_v41, %v535_v32  ;;  %v2416_v35 = vld [vmem:[#allocation42_spill] sm:$0xff]  ;;  %v2417_v40 = vld [vmem:[#allocation43_spill] sm:$0xff] }
  0xb1   : > { %774 = vxpose.xlu0.c.b16.cont [7/8] (narrow) %v492_v38, 64  ;;  %v566_v38 = vsub.f32 %v2405_v9, %v534_v22  ;;  %v485_v37 = vpack.c.bf16 %v461_v28, %v460_v27  ;;  %v577_v58 = vpack.c.bf16 %v549_v8, %v548_v50  ;;  %v520_v53 = vunpack.c.l.bf16 %v2407_v49  ;;  %v2418_v22 = vld [vmem:[#allocation50_spill] sm:$0xff]  ;;  %v2419_v28 = vld [vmem:[#allocation45_spill] sm:$0xff]  ;;  %v2425_v9 = vld [vmem:[#allocation52_spill] sm:$0xff] }
  0xb2   : > { %v521_v51 = vunpack.c.h.bf16 %v2407_v49  ;;  %v550_v17 = vsub.f32 %v2408_v57, %v518_v52  ;;  %v551_v4 = vsub.f32 %v2409_v62, %v519_v44  ;;  %v568_v10 = vsub.f32 %v2410_v47, %v536_v61  ;;  %v2420_v12 = vld [vmem:[#allocation46_spill] sm:$0xff]  ;;  %v2423_v52 = vld [vmem:[#allocation49_spill] sm:$0xff] }
  0xb3   : > { %758 = vxpose.xlu1.c.b16.cont [7/8] (narrow) %v484_v1, 64  ;;  %1002 = vmatpush3.bf16.msra.mxu0 %v576_v45  ;;  %v569_v24 = vsub.f32 %v2411_v3, %v537_v43  ;;  %v586_v7 = vpack.c.bf16 %v567_v14, %v566_v38  ;;  %v538_v1 = vunpack.c.l.bf16 %v2412_v25  ;;  %v539_v0 = vunpack.c.h.bf16 %v2412_v25  ;;  %v2424_v43 = vld [vmem:[#allocation51_spill] sm:$0xff] }
  0xb4   : > { %1003 = vmatprep.subr.bf16.mxu0 %v585_v39  ;;  %v552_v20 = vsub.f32 %v2413_v31, %v520_v53  ;;  %v553_v34 = vsub.f32 %v2414_v29, %v521_v51  ;;  %v578_v48 = vpack.c.bf16 %v551_v4, %v550_v17  ;;  %v522_v30 = vunpack.c.l.bf16 %v2415_v59 }
  0xb5   : > { %775 = vxpose.xlu0.c.b16.end [8/8] (narrow) %v493_v13, 64  ;;  %v587_v63 = vpack.c.bf16 %v569_v24, %v568_v10  ;;  %v523_v18 = vunpack.c.h.bf16 %v2415_v59  ;;  %v570_v26 = vsub.f32 %v2416_v35, %v538_v1  ;;  %v571_v60 = vsub.f32 %v2417_v40, %v539_v0  ;;  %v2421_v13 = vld [vmem:[#allocation53_spill] sm:$0xff] }
  0xb6   : > { %v540_v54 = vunpack.c.l.bf16 %v2418_v22  ;;  %v541_v27 = vunpack.c.h.bf16 %v2418_v22  ;;  %v579_v23 = vpack.c.bf16 %v553_v34, %v552_v20  ;;  %v554_v56 = vsub.f32 %v2419_v28, %v522_v30 }
  0xb7   : > { %759 = vxpose.xlu1.c.b16.end [8/8] (narrow) %v485_v37, 64  ;;  %1004 = vmatpush3.bf16.msra.mxu0 %v577_v58  ;;  %v555_v32 = vsub.f32 %v2420_v12, %v523_v18  ;;  %v524_v45 = vunpack.c.l.bf16 %v2421_v13  ;;  %v525_v19 = vunpack.c.h.bf16 %v2421_v13  ;;  %v588_v50 = vpack.c.bf16 %v571_v60, %v570_v26 }
  0xb8   : > { %1005 = vmatprep.subr.bf16.mxu0 %v586_v7  ;;  %v572_v8 = vsub.f32 %v2422_v2, %v540_v54  ;;  %v573_v44 = vsub.f32 %v2423_v52, %v541_v27  ;;  %vm873_vm1 = vcmask 523264  }
  0xb9   : > { %v580_v61 = vpack.c.bf16 %v555_v32, %v554_v56  ;;  %v556_v39 = vsub.f32 %v2424_v43, %v524_v45  ;;  %v557_v38 = vsub.f32 %v2425_v9, %v525_v19 }
  0xba   : > { %v589_v41 = vpack.c.bf16 %v573_v44, %v572_v8 }
  0xbb   : > { %1006 = vmatpush3.bf16.msra.mxu0 %v578_v48  ;;  %v581_v14 = vpack.c.bf16 %v557_v38, %v556_v39 }
  0xbc   : > { %1007 = vmatprep.subr.bf16.mxu0 %v587_v63 }
  0xbf   : > { %1008 = vmatpush3.bf16.msra.mxu0 %v579_v23 }
  0xc0   : > { %1009 = vmatprep.subr.bf16.mxu0 %v588_v50 }
  0xc3   : > { %1010 = vmatpush3.bf16.msra.mxu0 %v580_v61 }
  0xc4   : > { %1011 = vmatprep.subr.bf16.mxu0 %v589_v41 }
  0xc7   : > { %1012 = vmatpush3.bf16.msra.mxu0 %v581_v14 }
  0xc8   : > { %1077 = vmatprep.subr.bf16.mxu0 %v1540_v5 }
  0xdf   : > { %v614_v37 = vpop.trf.xlu0 }
  0xe0   : > { %654 = vmatprep.mubr.bf16.mxu0 %v614_v37  ;;  %719 = vmatprep.mubr.bf16.mxu1 %v614_v37 }
  0xe1   : > { %v598_v58 = vpop.trf.xlu1 }
  0xe2   : > { %655 = vmatmul.mubr.bf16.vlgmr.msra.gmra.mrb[0].mxu0 %v598_v58  ;;  %720 = vmatmul.mubr.bf16.vlgmr.msra.gmra.mrb[0].mxu1 %v598_v58 }
  0xe3   : > { %v615_v53 = vpop.trf.xlu0  ;;  %1078 = vmatpush3.bf16.msra.mxu0 %v1558_v11  ;;  %1125 = vmatpush3.bf16.msra.mxu1 %v1558_v11 }
  0xe4   : > { %662 = vmatprep.mubr.bf16.mxu0 %v615_v53  ;;  %1079 = vmatprep.subr.bf16.mxu0 %v1571_v15 }
  0xe5   : > { %727 = vmatprep.mubr.bf16.mxu1 %v615_v53  ;;  %1118 = vmatprep.subr.bf16.mxu1 %v1571_v15  ;;  %v599_v5 = vpop.trf.xlu1 }
  0xe7   : > { %1080 = vmatpush3.bf16.msra.mxu0 %v1575_v16  ;;  %v616_v51 = vpop.trf.xlu0  ;;  %1126 = vmatpush3.bf16.msra.mxu1 %v1575_v16 }
  0xe8   : > { %1081 = vmatprep.subr.bf16.mxu0 %v2385_v46  ;;  %1119 = vmatprep.subr.bf16.mxu1 %v2385_v46 }
  0xe9   : > { %v600_v11 = vpop.trf.xlu1 }
  0xea   : > { %663 = vmatmul.mubr.bf16.gmra.mrb[4].mxu0 %v599_v5  ;;  %728 = vmatmul.mubr.bf16.gmra.mrb[4].mxu1 %v599_v5 }
  0xeb   : > { %1082 = vmatpush3.bf16.msra.mxu0 %v2388_v6  ;;  %670 = vmatprep.mubr.bf16.mxu0 %v616_v51  ;;  %v617_v15 = vpop.trf.xlu0 }
  0xec   : > { %1083 = vmatprep.subr.bf16.mxu0 %v2393_v21  ;;  %735 = vmatprep.mubr.bf16.mxu1 %v616_v51 }
  0xed   : > { %1127 = vmatpush3.bf16.msra.mxu1 %v2388_v6  ;;  %v601_v16 = vpop.trf.xlu1 }
  0xee   : > { %1120 = vmatprep.subr.bf16.mxu1 %v2393_v21 }
  0xef   : > { %1084 = vmatpush3.bf16.msra.mxu0 %v2395_v55 }
  0xf0   : > { %1085 = vmatprep.subr.bf16.mxu0 %v2397_v36 }
  0xf1   : > { %1128 = vmatpush3.bf16.msra.mxu1 %v2395_v55 }
  0xf2   : > { %671 = vmatmul.mubr.bf16.gmra.mrb[8].mxu0 %v600_v11  ;;  %736 = vmatmul.mubr.bf16.gmra.mrb[8].mxu1 %v600_v11 }
  0xf3   : > { %1086 = vmatpush3.bf16.msra.mxu0 %v2403_v42  ;;  %678 = vmatprep.mubr.bf16.mxu0 %v617_v15 }
  0xf4   : > { %1087 = vmatprep.subr.bf16.mxu0 %v2404_v33  ;;  %1121 = vmatprep.subr.bf16.mxu1 %v2397_v36 }
  0xf5   : > { %743 = vmatprep.mubr.bf16.mxu1 %v617_v15  ;;  %1129 = vmatpush3.bf16.msra.mxu1 %v2403_v42 }
  0xf6   : > { %1122 = vmatprep.subr.bf16.mxu1 %v2404_v33 }
  0xf7   : > { %1088 = vmatpush3.bf16.msra.mxu0 %v2407_v49 }
  0xf8   : > { %1089 = vmatprep.subr.bf16.mxu0 %v2412_v25 }
  0xf9   : > { %1130 = vmatpush3.bf16.msra.mxu1 %v2407_v49 }
  0xfa   : > { %679 = vmatmul.mubr.bf16.gmra.mrb[12].mxu0 %v601_v16  ;;  %744 = vmatmul.mubr.bf16.gmra.mrb[12].mxu1 %v601_v16 }
  0xfb   : > { %1090 = vmatpush3.bf16.msra.mxu0 %v2415_v59  ;;  %1123 = vmatprep.subr.bf16.mxu1 %v2412_v25 }
  0xfc   : > { %1091 = vmatprep.subr.bf16.mxu0 %v2418_v22 }
  0xfd   : > { %1131 = vmatpush3.bf16.msra.mxu1 %v2415_v59 }
  0xfe   : > { %1124 = vmatprep.subr.bf16.mxu1 %v2418_v22 }
  0xff   : > { %v776_v46 = vpop.trf.xlu0  ;;  %1092 = vmatpush3.bf16.msra.mxu0 %v2421_v13 }
 0x100   : > { %816 = vmatprep.mubr.bf16.mxu0 %v776_v46 }
 0x101   : > { %v760_v6 = vpop.trf.xlu1  ;;  %1132 = vmatpush3.bf16.msra.mxu1 %v2421_v13 }
 0x102   : > { %817 = vmatmul.mubr.bf16.vlgmr.msra.gmra.mrb[16].mxu0 %v760_v6 }
 0x103   : > { %v777_v21 = vpop.trf.xlu0 }
 0x104   : > { %824 = vmatprep.mubr.bf16.mxu0 %v777_v21 }
 0x105   : > { %v761_v55 = vpop.trf.xlu1 }
 0x107   : > { %v778_v36 = vpop.trf.xlu0 }
 0x108   : > { %832 = vmatprep.mubr.bf16.mxu1 %v778_v36  ;;  %v857_v36 = vld [vmem:[%s1519_s9] sm:$0xff] }
 0x109   : > { %v762_v42 = vpop.trf.xlu1 }
 0x10a   : > { %825 = vmatmul.mubr.bf16.gmra.mrb[20].mxu0 %v761_v55  ;;  %833 = vmatmul.mubr.bf16.vlgmr.msra.gmra.mrb[16].mxu1 %v762_v42 }
 0x10b   : > { %v779_v33 = vpop.trf.xlu0 }
 0x10c   : > { %840 = vmatprep.mubr.bf16.mxu1 %v779_v33 }
 0x10d   : > { %v763_v49 = vpop.trf.xlu1 }
 0x112   : > { %841 = vmatmul.mubr.bf16.gmra.mrb[20].mxu1 %v763_v49 }
 0x1b5   : > { %v1013_v57 = vpop.f32.mrb[0].mxu0  ;;  %v1053_v17 = vpop.f32.mrb[0].mxu1 }
 0x1b6   : > { %v1014_v62 = vpop.f32.mrb[1].mxu0  ;;  %v1054_v4 = vpop.f32.mrb[1].mxu1 }
 0x1b7   : > { %v1015_v47 = vadd.f32 %v1014_v62, %v1013_v57  ;;  %v1055_v10 = vadd.f32 %v1054_v4, %v1053_v17  ;;  %v1016_v3 = vpop.f32.mrb[2].mxu0  ;;  %v1056_v24 = vpop.f32.mrb[2].mxu1  ;;  %v858_v57 = vld [vmem:[%s1519_s9 + $0x8] sm:$0xff] }
 0x1b8   : > { %v1017_v7 = vpop.f32.mrb[3].mxu0  ;;  %v1057_v25 = vpop.f32.mrb[3].mxu1 }
 0x1b9   : > { %v722_v1 = vadd.f32 %v1055_v10, %v1015_v47  ;;  %v1018_v0 = vadd.f32 %v1017_v7, %v1016_v3  ;;  %v1058_v31 = vadd.f32 %v1057_v25, %v1056_v24 }
 0x1bb   : > { %v725_v20 = vadd.f32 %v1058_v31, %v1018_v0  ;;  %v859_v31 = vld [vmem:[%s1519_s9 + $0x10] sm:$0xff] }
 0x1bd   : > { %v1019_v29 = vpop.f32.mrb[4].mxu0  ;;  %v1059_v34 = vpop.f32.mrb[4].mxu1 }
 0x1be   : > { %v1020_v48 = vpop.f32.mrb[5].mxu0  ;;  %v1060_v63 = vpop.f32.mrb[5].mxu1 }
 0x1bf   : > { %v1021_v59 = vadd.f32 %v1020_v48, %v1019_v29  ;;  %v1061_v30 = vadd.f32 %v1060_v63, %v1059_v34  ;;  %v1022_v18 = vpop.f32.mrb[6].mxu0  ;;  %v1062_v35 = vpop.f32.mrb[6].mxu1  ;;  %v861_v29 = vld [vmem:[%s1519_s9 + $0x20] sm:$0xff] }
 0x1c0   : > { %v1023_v26 = vpop.f32.mrb[7].mxu0  ;;  %v1063_v40 = vpop.f32.mrb[7].mxu1 }
 0x1c1   : > { %v730_v60 = vadd.f32 %v1061_v30, %v1021_v59  ;;  %v1024_v22 = vadd.f32 %v1023_v26, %v1022_v18  ;;  %v1064_v54 = vadd.f32 %v1063_v40, %v1062_v35  ;;  %v860_v18 = vld [vmem:[%s1519_s9 + $0x18] sm:$0xff]  ;;  %v862_v35 = vld [vmem:[%s1519_s9 + $0x28] sm:$0xff] }
 0x1c3   : > { %v2181_v27 = vadd.f32 %v1064_v54, %v1024_v22 }
 0x1c5   : > { %v1025_v23 = vpop.f32.mrb[8].mxu0  ;;  %v1065_v28 = vpop.f32.mrb[8].mxu1 }
 0x1c6   : > { %v1026_v56 = vpop.f32.mrb[9].mxu0  ;;  %v1066_v12 = vpop.f32.mrb[9].mxu1 }
 0x1c7   : > { %v1027_v32 = vadd.f32 %v1026_v56, %v1025_v23  ;;  %v1067_v13 = vadd.f32 %v1066_v12, %v1065_v28  ;;  %v1028_v45 = vpop.f32.mrb[10].mxu0  ;;  %v1068_v19 = vpop.f32.mrb[10].mxu1 }
 0x1c8   : > { %v1029_v50 = vpop.f32.mrb[11].mxu0  ;;  %v1069_v2 = vpop.f32.mrb[11].mxu1 }
 0x1c9   : > { %v738_v8 = vadd.f32 %v1067_v13, %v1027_v32  ;;  %v1030_v52 = vadd.f32 %v1029_v50, %v1028_v45  ;;  %v1070_v44 = vadd.f32 %v1069_v2, %v1068_v19  ;;  %v863_v13 = vld [vmem:[%s1519_s9 + $0x30] sm:$0xff]  ;;  %v864_v50 = vld [vmem:[%s1519_s9 + $0x38] sm:$0xff] }
 0x1cb   : > { %v741_v61 = vadd.f32 %v1070_v44, %v1030_v52 }
 0x1cd   : > { %v1031_v43 = vpop.f32.mrb[12].mxu0  ;;  %v1071_v39 = vpop.f32.mrb[12].mxu1 }
 0x1ce   : > { %v1032_v9 = vpop.f32.mrb[13].mxu0  ;;  %v1072_v38 = vpop.f32.mrb[13].mxu1 }
 0x1cf   : > { %v1033_v41 = vadd.f32 %v1032_v9, %v1031_v43  ;;  %v1073_v14 = vadd.f32 %v1072_v38, %v1071_v39  ;;  %v1034_v37 = vpop.f32.mrb[14].mxu0  ;;  %v1074_v58 = vpop.f32.mrb[14].mxu1 }
 0x1d0   : > { %v1035_v53 = vpop.f32.mrb[15].mxu0  ;;  %v1075_v5 = vpop.f32.mrb[15].mxu1 }
 0x1d1   : > { %v746_v51 = vadd.f32 %v1073_v14, %v1033_v41  ;;  %v1036_v11 = vadd.f32 %v1035_v53, %v1034_v37  ;;  %v1076_v15 = vadd.f32 %v1075_v5, %v1074_v58 }
 0x1d3   : > { %v749_v16 = vadd.f32 %v1076_v15, %v1036_v11 }
 0x1d5   : > { %v1093_v46 = vpop.f32.mrb[16].mxu0 }
 0x1d6   : > { %v1094_v6 = vpop.f32.mrb[17].mxu0 }
 0x1d7   : > { %v1095_v21 = vadd.f32 %v1094_v6, %v1093_v46  ;;  %v1096_v55 = vpop.f32.mrb[18].mxu0 }
 0x1d8   : > { %v1097_v42 = vpop.f32.mrb[19].mxu0 }
 0x1d9   : > { %v849_v33 = vadd.f32 %v1095_v21, %v722_v1  ;;  %v1098_v49 = vadd.f32 %v1097_v42, %v1096_v55 }
 0x1db   : > { %v865_v17 = vadd.f32 %v857_v36, %v849_v33  ;;  %v850_v62 = vadd.f32 %v1098_v49, %v725_v20 }
 0x1dd   : > { %874 = vst.msk [vmem:[%s1519_s9] sm:$0xff] %vm873_vm1, %v865_v17  ;;  %v866_v4 = vadd.f32 %v858_v57, %v850_v62  ;;  %v1099_v47 = vpop.f32.mrb[20].mxu0  ;;  %v1105_v10 = vpop.f32.mrb[16].mxu1 }
 0x1de   : > { %v1100_v3 = vpop.f32.mrb[21].mxu0  ;;  %v1106_v24 = vpop.f32.mrb[17].mxu1 }
 0x1df   : > { %875 = vst.msk [vmem:[%s1519_s9 + $0x8] sm:$0xff] %vm873_vm1, %v866_v4  ;;  %v1101_v7 = vadd.f32 %v1100_v3, %v1099_v47  ;;  %v1107_v25 = vadd.f32 %v1106_v24, %v1105_v10  ;;  %v1102_v1 = vpop.f32.mrb[22].mxu0  ;;  %v1108_v0 = vpop.f32.mrb[18].mxu1 }
 0x1e0   : > { %v1103_v20 = vpop.f32.mrb[23].mxu0  ;;  %v1109_v34 = vpop.f32.mrb[19].mxu1 }
 0x1e1   : > { %v851_v48 = vadd.f32 %v1101_v7, %v730_v60  ;;  %v853_v63 = vadd.f32 %v1107_v25, %v738_v8  ;;  %v1104_v59 = vadd.f32 %v1103_v20, %v1102_v1  ;;  %v1110_v30 = vadd.f32 %v1109_v34, %v1108_v0 }
 0x1e3   : > { %v867_v26 = vadd.f32 %v859_v31, %v851_v48  ;;  %v869_v40 = vadd.f32 %v861_v29, %v853_v63  ;;  %v852_v22 = vadd.f32 %v1104_v59, %v2181_v27  ;;  %v854_v54 = vadd.f32 %v1110_v30, %v741_v61 }
 0x1e5   : > { %876 = vst.msk [vmem:[%s1519_s9 + $0x10] sm:$0xff] %vm873_vm1, %v867_v26  ;;  %878 = vst.msk [vmem:[%s1519_s9 + $0x20] sm:$0xff] %vm873_vm1, %v869_v40  ;;  %v868_v60 = vadd.f32 %v860_v18, %v852_v22  ;;  %v870_v23 = vadd.f32 %v862_v35, %v854_v54  ;;  %v1111_v28 = vpop.f32.mrb[20].mxu1 }
 0x1e6   : > { %v1112_v56 = vpop.f32.mrb[21].mxu1 }
 0x1e7   : > { %877 = vst.msk [vmem:[%s1519_s9 + $0x18] sm:$0xff] %vm873_vm1, %v868_v60  ;;  %879 = vst.msk [vmem:[%s1519_s9 + $0x28] sm:$0xff] %vm873_vm1, %v870_v23  ;;  %v1113_v12 = vadd.f32 %v1112_v56, %v1111_v28  ;;  %v1114_v32 = vpop.f32.mrb[22].mxu1 }
 0x1e8   : > { %v1115_v27 = vpop.f32.mrb[23].mxu1 }
 0x1e9   : > { %v855_v45 = vadd.f32 %v1113_v12, %v746_v51  ;;  %v1116_v19 = vadd.f32 %v1115_v27, %v1114_v32 }
 0x1eb   : > { %v871_v2 = vadd.f32 %v863_v13, %v855_v45  ;;  %v856_v8 = vadd.f32 %v1116_v19, %v749_v16 }
 0x1ed   : > { %880 = vst.msk [vmem:[%s1519_s9 + $0x30] sm:$0xff] %vm873_vm1, %v871_v2  ;;  %v872_v52 = vadd.f32 %v864_v50, %v856_v8 }
 0x1ef   : > { %881 = vst.msk [vmem:[%s1519_s9 + $0x38] sm:$0xff] %vm873_vm1, %v872_v52 }
 0x1f0 PF: > { %s1134_s10 = scalar_select %p1485_p2, [#allocation4], [#allocation10] }
 0x1f1   : > { %s2442_s20 = smov (!%p1485_p2, %s1355_s20), 0  ;;  %s1133_s2 = smul.u32 80, %s1359_s21 }
 0x1f2   : > { %s890_s13 = sld [smem:[%s1134_s10 + %s2442_s20]]  ;;  %s899_s3 = sshll.u32 %s1519_s9, 4  ;;  %s2215_s3 = int_to_ptr.vmem [resolvable:$true] %s899_s3 }
 0x1f3   : > { %s2224_s29 = scalar_lea.sflag [#allocation9], %s166_s12  ;;  %s1275_s0 = scalar_lea.vmem %s2215_s3, 1024 }
 0x1f4   : > { %p1276_p13 = scmp.ne.s32.totalorder %s2215_s3, %s1275_s0  ;;  %s1379_s20 = smov [#allocation8]  }
 0x1f5   : > { %s1279_s21 = sshll.u32 %s1379_s20, 4  ;;  %s1280_s21 = int_to_ptr.vmem [resolvable:$false] %s1279_s21 }
 0x1f6   : > { %p1277_p0 = pnand %p1276_p13, %p1485_p2  ;;  %s1281_s7 = scalar_lea.vmem %s1280_s21, 2048 }
 0x1f7   : > { %p1282_p3 = scmp.lt.s32.totalorder %s2215_s3, %s1280_s21  ;;  %p1283_p5 = scmp.lt.s32.totalorder %s1281_s7, %s1275_s0 }
 0x1f8   : > { %s993_s14 = sshll.u32 %s890_s13, 3  ;;  %p1278_p1 = pneg %p1277_p0 }
 0x1f9   : > { %s896_s15 = sadd.s32 %s1133_s2, %s993_s14  ;;  %p1284_p6 = por %p1283_p5, %p1282_p3 }
 0x1fa   : > { %s994_s16 = sshll.u32 %s896_s15, 7 }
 0x1fb   : > { %s2220_s26 = scalar_lea.hbm %s2278_s6, %s994_s16  ;;  %p1285_p7 = pnand %p1284_p6, %p1278_p1 }
 0x1fd   : > { %1288 = shalt.err (!%p1285_p7)
}
 0x1fe   : > { %s1289_s12 = scalar_lea.hbm %s2220_s26, 1024  ;;  %s1293_s10 = scalar_lea.hbm %s2278_s6, 20480 }
 0x1ff   : > { %p1290_p8 = scmp.ne.s32.totalorder %s2220_s26, %s1289_s12  ;;  %p1294_p11 = scmp.lt.u32.totalorder %s2220_s26, %s2278_s6 }
 0x200   : > { %p1295_p12 = scmp.lt.u32.totalorder %s1293_s10, %s1289_s12  ;;  %p1297_p0 = scmp.lt.u32.totalorder %s1289_s12, %s2220_s26 }
 0x201   : > { %p1291_p9 = pnand %p1290_p8, %p1485_p2 }
 0x202   : > { %p1296_p13 = por %p1295_p12, %p1294_p11 }
 0x203   : > { %p1292_p10 = pneg %p1291_p9 }
 0x204   : > { %p1298_p1 = por %p1297_p0, %p1296_p13 }
 0x206   : > { %p1299_p3 = pnand %p1298_p1, %p1292_p10 }
 0x208   : > { %1302 = shalt.err (!%p1299_p3)
}
 0x209   : > { %s1380_s14 = smov 128   ;;  %s1381_s15 = smov 8  }
 0x20a   : > { %1136 = dma.vmem_to_hbm [thread:$0]  (%p1485_p2), %s2215_s3, 1024, %s2220_s26, %s2224_s29, %s1380_s14, %s1380_s14, %s1381_s15  }
 0x20b PF: > { %p1142_p5 = scmp.ge.s32.totalorder %s1371_s24, 2  ;;  %s914_s16 = sand.u32 1, %s1343_s18  }
 0x20c   : > { %s915_s17 = scalar_lea.sflag [#allocation9], %s914_s16 }
 0x20d   : > { %p1139_p6 = pnand %p1142_p5, %p1491_p4 }
 0x20f   : > { %1338 = dma.done.wait (!%p1139_p6), %s915_s17, 1024  }
 0x210   : > { %1340 = vsyncadd (!%p1139_p6), %s915_s17, 4294966272  ;;  %s41_s24 = sadd.s32 1, %s1371_s24   ;;  %s2426_s18 = smov %s1347_s19 }
 0x211   : > { %p38_p7 = scmp.ge.s32.totalorder %s41_s24, 30   ;;  %s2427_s19 = smov %s1351_s4 }
 0x212   : > { %s2428_s4 = smov %s1501_s11  ;;  %s2429_s20 = smov %s1363_s22 }
 0x213   : > { %s2430_s21 = smov %s1367_s23  ;;  %s2431_s22 = smov %s2434_s27 }
 0x214   : > { %s2432_s23 = smov %s2438_s28  ;;  %40 = sbr.rel (!%p38_p7) target bundleno = 61 (0x3d), region = 67 }
 0x21b   :  { %920 = vsyncpa [#allocation9], 1 }
 0x21c   :  { %922 = vsyncpa [#allocation9 + $0x1], 1 }

</bundles_post_ra>
